<compile_context>
chip_gen: v6e
topology: v6e:2x2x1
jax: 0.10.0
libtpu: 0.0.40
codegen_flags: <defaults>
</compile_context>

<pallas_src>
import functools

import jax
import jax.numpy as jnp
from jax.experimental import pallas as pl
from jax.experimental.pallas import tpu as pltpu


_PAD = 128  # lane-aligned halo width around the flattened image inside the scratch


def _resblock_kernel(x_ref, w1_ref, w2_ref, g1_ref, b1_ref, g2_ref, b2_ref,
                     ml_ref, mr_ref, o_ref, xpad_ref, pat_ref,
                     *, n_batch, n_chan, cp, H, W, eps):
    HW = H * W
    NHW = n_batch * HW
    inv_cnt = 1.0 / float(n_batch * HW)
    mxu_dtype = pat_ref.dtype

    # --- one-time scratch init: only the halo strips + channel-padding rows ----------
    xpad_ref[:, :, :_PAD] = jnp.zeros((3, n_chan, _PAD), mxu_dtype)
    xpad_ref[:, :, _PAD + HW:] = jnp.zeros((3, n_chan, _PAD), mxu_dtype)
    if cp > n_chan:  # zero the (never overwritten) channel-padding rows once
        for t in range(9):
            pat_ref[t * cp + n_chan:(t + 1) * cp, :] = jnp.zeros(
                (cp - n_chan, NHW), mxu_dtype)

    mask_l = ml_ref[...]   # (1, HW): 0 at image column 0
    mask_r = mr_ref[...]   # (1, HW): 0 at image column W-1

    def fill_patches(imgs):
        """imgs: list of n_batch (C, HW) f32 images -> batched im2col matrix in pat_ref."""
        for n in range(n_batch):
            img = imgs[n]
            # Three dx-variants of the flat padded image (input-side edge masking):
            #   variant 0 (dx = -1 taps): image column W-1 zeroed
            #   variant 1 (dx =  0 taps): unmasked
            #   variant 2 (dx = +1 taps): image column 0  zeroed
            xpad_ref[0, :, _PAD:_PAD + HW] = (img * mask_r).astype(mxu_dtype)
            xpad_ref[1, :, _PAD:_PAD + HW] = img.astype(mxu_dtype)
            xpad_ref[2, :, _PAD:_PAD + HW] = (img * mask_l).astype(mxu_dtype)
            for dy in range(3):
                for dx in range(3):
                    t = dy * 3 + dx
                    s = (dy - 1) * W + (dx - 1)          # flat-index tap shift
                    tap = xpad_ref[dx, :, _PAD + s:_PAD + s + HW]   # (C, HW)
                    pat_ref[t * cp:t * cp + n_chan, n * HW:(n + 1) * HW] = tap

    def conv_batched(imgs, w_ref):
        """3x3 'same' conv of all batch images as one (C, 9*cp) x (9*cp, N*HW) matmul."""
        fill_patches(imgs)
        return jnp.dot(w_ref[...], pat_ref[...],
                       preferred_element_type=jnp.float32)          # (C, N*HW) f32

    def bn_scale_shift(h, g_ref, b_ref):
        """Train-mode BatchNorm2d stats (single pass) over the fused (C, N*HW) array."""
        tot = jnp.sum(h, axis=1, keepdims=True)
        sq = jnp.sum(h * h, axis=1, keepdims=True)
        mean = tot * inv_cnt
        var = jnp.maximum(sq * inv_cnt - mean * mean, 0.0)           # biased variance
        scale = g_ref[...] / jnp.sqrt(var + eps)
        shift = b_ref[...] - mean * scale
        return scale, shift

    xs = [x_ref[n].astype(jnp.float32) for n in range(n_batch)]

    # conv1 (one batched matmul) -> BN1 -> LeakyReLU(0.2)
    h1 = conv_batched(xs, w1_ref)
    s1, t1 = bn_scale_shift(h1, g1_ref, b1_ref)
    a1 = h1 * s1 + t1
    a1 = jnp.where(a1 >= 0, a1, 0.2 * a1)

    # conv2 (one batched matmul) -> BN2 -> residual; lane-dense (C, HW) stores.
    h2 = conv_batched([a1[:, n * HW:(n + 1) * HW] for n in range(n_batch)], w2_ref)
    s2, t2 = bn_scale_shift(h2, g2_ref, b2_ref)
    y = h2 * s2 + t2
    for n in range(n_batch):
        o_ref[n] = (xs[n] + y[:, n * HW:(n + 1) * HW]).astype(o_ref.dtype)


def _pack_conv_weight(w_oihw, cp, dtype):
    """(O, I, 3, 3) OIHW -> (O, 9*cp) in MXU dtype; column = (ky*3+kx)*cp + i."""
    O, I, KH, KW = w_oihw.shape
    wt = jnp.transpose(w_oihw, (0, 2, 3, 1))                 # (O, KH, KW, I)
    wt = jnp.pad(wt, ((0, 0), (0, 0), (0, 0), (0, cp - I)))  # pad I -> cp
    return wt.reshape(O, KH * KW * cp).astype(dtype)


def resblock_forward(params, x, eps=1e-5, mxu_dtype=jnp.bfloat16):
    """x: (N, C, H, W) NCHW.  params: w1/w2 OIHW (C,C,3,3); g1/b1/g2/b2 (C,)."""
    N, C, H, W = x.shape
    HW = H * W
    sub = 8 * (4 // jnp.dtype(mxu_dtype).itemsize)           # 8 for f32, 16 for bf16
    CP = ((C + sub - 1) // sub) * sub
    if W + 1 > _PAD:
        raise ValueError("W too large for the flat-halo scheme; add spatial tiling.")
    # TODO(synk): for large N*H*W add a spatial/batch grid (axes marked 'parallel',
    # per-core partial-sum BN statistics combined in a second pass) so v7x's two
    # TensorCores both get work and BlockSpec double-buffering overlaps HBM DMA with
    # compute; size the spatial tile against v7x's 64 MiB VMEM (pat scratch is 9x the
    # activation tile). At this size the single whole-batch VMEM block is faster.

    x_flat = x.reshape(N, C, HW)
    w1 = _pack_conv_weight(params["w1"], CP, mxu_dtype)
    w2 = _pack_conv_weight(params["w2"], CP, mxu_dtype)
    g1 = params["g1"].reshape(C, 1).astype(jnp.float32)
    b1 = params["b1"].reshape(C, 1).astype(jnp.float32)
    g2 = params["g2"].reshape(C, 1).astype(jnp.float32)
    b2 = params["b2"].reshape(C, 1).astype(jnp.float32)

    # Image-edge column masks (computed once on host).
    col = jnp.arange(HW, dtype=jnp.int32) % W
    mask_l = (col != 0).astype(jnp.float32).reshape(1, HW)
    mask_r = (col != W - 1).astype(jnp.float32).reshape(1, HW)

    kernel = functools.partial(
        _resblock_kernel, n_batch=N, n_chan=C, cp=CP, H=H, W=W, eps=eps)

    out_flat = pl.pallas_call(
        kernel,
        out_shape=jax.ShapeDtypeStruct((N, C, HW), x.dtype),
        in_specs=[pl.BlockSpec(memory_space=pltpu.MemorySpace.VMEM)] * 9,
        out_specs=pl.BlockSpec(memory_space=pltpu.MemorySpace.VMEM),
        scratch_shapes=[
            pltpu.VMEM((3, C, HW + 2 * _PAD), mxu_dtype),   # 3 dx-variant padded images
            pltpu.VMEM((9 * CP, N * HW), mxu_dtype),        # batched im2col patch matrix
        ],
        compiler_params=pltpu.CompilerParams(vmem_limit_bytes=32 * 1024 * 1024),
    )(x_flat, w1, w2, g1, b1, g2, b2, mask_l, mask_r)

    return out_flat.reshape(N, C, H, W)


# ----------------------------------------------------------------------------
# Pure-JAX reference (PyTorch ResBlock semantics, train-mode BN).
# ----------------------------------------------------------------------------
def resblock_reference(params, x, eps=1e-5):
    def conv(v, w):
        return jax.lax.conv_general_dilated(
            v, w, (1, 1), [(1, 1), (1, 1)],
            dimension_numbers=("NCHW", "OIHW", "NCHW"),
            precision=jax.lax.Precision.HIGHEST)

    def bn(v, g, b):
        m = jnp.mean(v, axis=(0, 2, 3), keepdims=True)
        var = jnp.mean(jnp.square(v - m), axis=(0, 2, 3), keepdims=True)
        return (v - m) / jnp.sqrt(var + eps) * g.reshape(1, -1, 1, 1) \
            + b.reshape(1, -1, 1, 1)

    h = conv(x, params["w1"])
    h = bn(h, params["g1"], params["b1"])
    h = jnp.where(h >= 0, h, 0.2 * h)
    h = conv(h, params["w2"])
    h = bn(h, params["g2"], params["b2"])
    return x + h


if __name__ == "__main__":
    N, C, H, W = 2, 8, 16, 16

    key = jax.random.PRNGKey(0)
    kw1, kw2, kg1, kb1, kg2, kb2, kx = jax.random.split(key, 7)
    params = {
        "w1": 0.1 * jax.random.normal(kw1, (C, C, 3, 3), jnp.float32),
        "w2": 0.1 * jax.random.normal(kw2, (C, C, 3, 3), jnp.float32),
        "g1": 1.0 + 0.1 * jax.random.normal(kg1, (C,), jnp.float32),
        "b1": 0.1 * jax.random.normal(kb1, (C,), jnp.float32),
        "g2": 1.0 + 0.1 * jax.random.normal(kg2, (C,), jnp.float32),
        "b2": 0.1 * jax.random.normal(kb2, (C,), jnp.float32),
    }
    x = jax.random.normal(kx, (N, C, H, W), jnp.float32)

    ref = resblock_reference(params, x)

    # f32-MXU path: tight numerical check of the kernel structure.
    out_f32 = jax.jit(functools.partial(resblock_forward, mxu_dtype=jnp.float32))(params, x)
    out_f32 = jax.block_until_ready(out_f32)
    assert out_f32.shape == (N, C, H, W), out_f32.shape
    err_f32 = float(jnp.max(jnp.abs(out_f32 - ref)))
    assert err_f32 < 2e-3, f"f32 path: max abs err vs reference: {err_f32}"

    # Default bf16-MXU path (native MXU operand type on v5e/v6e/v7x): loose tolerance.
    out_bf16 = jax.jit(resblock_forward)(params, x)
    out_bf16 = jax.block_until_ready(out_bf16)
    assert out_bf16.shape == (N, C, H, W), out_bf16.shape
    err_bf16 = float(jnp.max(jnp.abs(out_bf16 - ref)))
    assert err_bf16 < 1.5e-1, f"bf16 path: max abs err vs reference: {err_bf16}"

    print("KERNEL_OK")
</pallas_src>

<mosaic_0001>
module attributes {stable_mosaic.version = 11 : i64} {
  func.func @_resblock_kernel(%arg0: memref<2x8x256xf32, #tpu.memory_space<vmem>>, %arg1: memref<8x72xf32, #tpu.memory_space<vmem>>, %arg2: memref<8x72xf32, #tpu.memory_space<vmem>>, %arg3: memref<8x1xf32, #tpu.memory_space<vmem>>, %arg4: memref<8x1xf32, #tpu.memory_space<vmem>>, %arg5: memref<8x1xf32, #tpu.memory_space<vmem>>, %arg6: memref<8x1xf32, #tpu.memory_space<vmem>>, %arg7: memref<1x256xf32, #tpu.memory_space<vmem>>, %arg8: memref<1x256xf32, #tpu.memory_space<vmem>>, %arg9: memref<2x8x256xf32, #tpu.memory_space<vmem>>, %arg10: memref<3x8x512xf32, #tpu.memory_space<vmem>>, %arg11: memref<72x512xf32, #tpu.memory_space<vmem>>) attributes {dimension_semantics = [], scalar_prefetch = 0 : i64, scratch_operands = 2 : i64, tpu.core_type = #tpu.core_type<tc>} {
    %cst = arith.constant 0.000000e+00 : f32
    %0 = vector.broadcast %cst : f32 to vector<3x8x128xf32>
    %c0 = arith.constant 0 : index
    %c0_0 = arith.constant 0 : index
    %c0_1 = arith.constant 0 : index
    %1 = vector.load %arg10[%c0, %c0_0, %c0_1] : memref<3x8x512xf32, #tpu.memory_space<vmem>>, vector<3x8x128xf32>
    tpu.vector_store %arg10[%c0, %c0_0, %c0_1], %0 {strides = array<i32>} : memref<3x8x512xf32, #tpu.memory_space<vmem>>, vector<3x8x128xf32>,
    %cst_2 = arith.constant 0.000000e+00 : f32
    %2 = vector.broadcast %cst_2 : f32 to vector<3x8x128xf32>
    %c0_3 = arith.constant 0 : index
    %c0_4 = arith.constant 0 : index
    %c384 = arith.constant 384 : index
    %3 = vector.load %arg10[%c0_3, %c0_4, %c384] : memref<3x8x512xf32, #tpu.memory_space<vmem>>, vector<3x8x128xf32>
    tpu.vector_store %arg10[%c0_3, %c0_4, %c384], %2 {strides = array<i32>} : memref<3x8x512xf32, #tpu.memory_space<vmem>>, vector<3x8x128xf32>,
    %c0_5 = arith.constant 0 : index
    %c0_6 = arith.constant 0 : index
    %4 = vector.load %arg7[%c0_5, %c0_6] : memref<1x256xf32, #tpu.memory_space<vmem>>, vector<1x256xf32>
    %c0_7 = arith.constant 0 : index
    %c0_8 = arith.constant 0 : index
    %5 = vector.load %arg8[%c0_7, %c0_8] : memref<1x256xf32, #tpu.memory_space<vmem>>, vector<1x256xf32>
    %c0_9 = arith.constant 0 : index
    %c0_10 = arith.constant 0 : index
    %c0_11 = arith.constant 0 : index
    %6 = vector.load %arg0[%c0_9, %c0_10, %c0_11] : memref<2x8x256xf32, #tpu.memory_space<vmem>>, vector<1x8x256xf32>
    %7 = vector.shape_cast %6 : vector<1x8x256xf32> to vector<8x256xf32>
    %c1 = arith.constant 1 : index
    %c0_12 = arith.constant 0 : index
    %c0_13 = arith.constant 0 : index
    %8 = vector.load %arg0[%c1, %c0_12, %c0_13] : memref<2x8x256xf32, #tpu.memory_space<vmem>>, vector<1x8x256xf32>
    %9 = vector.shape_cast %8 : vector<1x8x256xf32> to vector<8x256xf32>
    %10 = vector.broadcast %5 : vector<1x256xf32> to vector<8x256xf32>
    %11 = arith.mulf %7, %10 : vector<8x256xf32>
    %c0_14 = arith.constant 0 : index
    %c0_15 = arith.constant 0 : index
    %c128 = arith.constant 128 : index
    %12 = vector.load %arg10[%c0_14, %c0_15, %c128] : memref<3x8x512xf32, #tpu.memory_space<vmem>>, vector<1x8x256xf32>
    %13 = vector.shape_cast %12 : vector<1x8x256xf32> to vector<8x256xf32>
    %14 = vector.shape_cast %11 : vector<8x256xf32> to vector<1x8x256xf32>
    tpu.vector_store %arg10[%c0_14, %c0_15, %c128], %14 {strides = array<i32>} : memref<3x8x512xf32, #tpu.memory_space<vmem>>, vector<1x8x256xf32>,
    %c1_16 = arith.constant 1 : index
    %c0_17 = arith.constant 0 : index
    %c128_18 = arith.constant 128 : index
    %15 = vector.load %arg10[%c1_16, %c0_17, %c128_18] : memref<3x8x512xf32, #tpu.memory_space<vmem>>, vector<1x8x256xf32>
    %16 = vector.shape_cast %15 : vector<1x8x256xf32> to vector<8x256xf32>
    %17 = vector.shape_cast %7 : vector<8x256xf32> to vector<1x8x256xf32>
    tpu.vector_store %arg10[%c1_16, %c0_17, %c128_18], %17 {strides = array<i32>} : memref<3x8x512xf32, #tpu.memory_space<vmem>>, vector<1x8x256xf32>,
    %18 = vector.broadcast %4 : vector<1x256xf32> to vector<8x256xf32>
    %19 = arith.mulf %7, %18 : vector<8x256xf32>
    %c2 = arith.constant 2 : index
    %c0_19 = arith.constant 0 : index
    %c128_20 = arith.constant 128 : index
    %20 = vector.load %arg10[%c2, %c0_19, %c128_20] : memref<3x8x512xf32, #tpu.memory_space<vmem>>, vector<1x8x256xf32>
    %21 = vector.shape_cast %20 : vector<1x8x256xf32> to vector<8x256xf32>
    %22 = vector.shape_cast %19 : vector<8x256xf32> to vector<1x8x256xf32>
    tpu.vector_store %arg10[%c2, %c0_19, %c128_20], %22 {strides = array<i32>} : memref<3x8x512xf32, #tpu.memory_space<vmem>>, vector<1x8x256xf32>,
    %c0_21 = arith.constant 0 : index
    %c0_22 = arith.constant 0 : index
    %c111 = arith.constant 111 : index
    %23 = vector.load %arg10[%c0_21, %c0_22, %c111] : memref<3x8x512xf32, #tpu.memory_space<vmem>>, vector<1x8x256xf32>
    %24 = vector.shape_cast %23 : vector<1x8x256xf32> to vector<8x256xf32>
    %c0_23 = arith.constant 0 : index
    %c0_24 = arith.constant 0 : index
    %25 = vector.load %arg11[%c0_23, %c0_24] : memref<72x512xf32, #tpu.memory_space<vmem>>, vector<8x256xf32>
    tpu.vector_store %arg11[%c0_23, %c0_24], %24 {strides = array<i32>} : memref<72x512xf32, #tpu.memory_space<vmem>>, vector<8x256xf32>,
    %c1_25 = arith.constant 1 : index
    %c0_26 = arith.constant 0 : index
    %c112 = arith.constant 112 : index
    %26 = vector.load %arg10[%c1_25, %c0_26, %c112] : memref<3x8x512xf32, #tpu.memory_space<vmem>>, vector<1x8x256xf32>
    %27 = vector.shape_cast %26 : vector<1x8x256xf32> to vector<8x256xf32>
    %c8 = arith.constant 8 : index
    %c0_27 = arith.constant 0 : index
    %28 = vector.load %arg11[%c8, %c0_27] : memref<72x512xf32, #tpu.memory_space<vmem>>, vector<8x256xf32>
    tpu.vector_store %arg11[%c8, %c0_27], %27 {strides = array<i32>} : memref<72x512xf32, #tpu.memory_space<vmem>>, vector<8x256xf32>,
    %c2_28 = arith.constant 2 : index
    %c0_29 = arith.constant 0 : index
    %c113 = arith.constant 113 : index
    %29 = vector.load %arg10[%c2_28, %c0_29, %c113] : memref<3x8x512xf32, #tpu.memory_space<vmem>>, vector<1x8x256xf32>
    %30 = vector.shape_cast %29 : vector<1x8x256xf32> to vector<8x256xf32>
    %c16 = arith.constant 16 : index
    %c0_30 = arith.constant 0 : index
    %31 = vector.load %arg11[%c16, %c0_30] : memref<72x512xf32, #tpu.memory_space<vmem>>, vector<8x256xf32>
    tpu.vector_store %arg11[%c16, %c0_30], %30 {strides = array<i32>} : memref<72x512xf32, #tpu.memory_space<vmem>>, vector<8x256xf32>,
    %c0_31 = arith.constant 0 : index
    %c0_32 = arith.constant 0 : index
    %c127 = arith.constant 127 : index
    %32 = vector.load %arg10[%c0_31, %c0_32, %c127] : memref<3x8x512xf32, #tpu.memory_space<vmem>>, vector<1x8x256xf32>
    %33 = vector.shape_cast %32 : vector<1x8x256xf32> to vector<8x256xf32>
    %c24 = arith.constant 24 : index
    %c0_33 = arith.constant 0 : index
    %34 = vector.load %arg11[%c24, %c0_33] : memref<72x512xf32, #tpu.memory_space<vmem>>, vector<8x256xf32>
    tpu.vector_store %arg11[%c24, %c0_33], %33 {strides = array<i32>} : memref<72x512xf32, #tpu.memory_space<vmem>>, vector<8x256xf32>,
    %c1_34 = arith.constant 1 : index
    %c0_35 = arith.constant 0 : index
    %c128_36 = arith.constant 128 : index
    %35 = vector.load %arg10[%c1_34, %c0_35, %c128_36] : memref<3x8x512xf32, #tpu.memory_space<vmem>>, vector<1x8x256xf32>
    %36 = vector.shape_cast %35 : vector<1x8x256xf32> to vector<8x256xf32>
    %c32 = arith.constant 32 : index
    %c0_37 = arith.constant 0 : index
    %37 = vector.load %arg11[%c32, %c0_37] : memref<72x512xf32, #tpu.memory_space<vmem>>, vector<8x256xf32>
    tpu.vector_store %arg11[%c32, %c0_37], %36 {strides = array<i32>} : memref<72x512xf32, #tpu.memory_space<vmem>>, vector<8x256xf32>,
    %c2_38 = arith.constant 2 : index
    %c0_39 = arith.constant 0 : index
    %c129 = arith.constant 129 : index
    %38 = vector.load %arg10[%c2_38, %c0_39, %c129] : memref<3x8x512xf32, #tpu.memory_space<vmem>>, vector<1x8x256xf32>
    %39 = vector.shape_cast %38 : vector<1x8x256xf32> to vector<8x256xf32>
    %c40 = arith.constant 40 : index
    %c0_40 = arith.constant 0 : index
    %40 = vector.load %arg11[%c40, %c0_40] : memref<72x512xf32, #tpu.memory_space<vmem>>, vector<8x256xf32>
    tpu.vector_store %arg11[%c40, %c0_40], %39 {strides = array<i32>} : memref<72x512xf32, #tpu.memory_space<vmem>>, vector<8x256xf32>,
    %c0_41 = arith.constant 0 : index
    %c0_42 = arith.constant 0 : index
    %c143 = arith.constant 143 : index
    %41 = vector.load %arg10[%c0_41, %c0_42, %c143] : memref<3x8x512xf32, #tpu.memory_space<vmem>>, vector<1x8x256xf32>
    %42 = vector.shape_cast %41 : vector<1x8x256xf32> to vector<8x256xf32>
    %c48 = arith.constant 48 : index
    %c0_43 = arith.constant 0 : index
    %43 = vector.load %arg11[%c48, %c0_43] : memref<72x512xf32, #tpu.memory_space<vmem>>, vector<8x256xf32>
    tpu.vector_store %arg11[%c48, %c0_43], %42 {strides = array<i32>} : memref<72x512xf32, #tpu.memory_space<vmem>>, vector<8x256xf32>,
    %c1_44 = arith.constant 1 : index
    %c0_45 = arith.constant 0 : index
    %c144 = arith.constant 144 : index
    %44 = vector.load %arg10[%c1_44, %c0_45, %c144] : memref<3x8x512xf32, #tpu.memory_space<vmem>>, vector<1x8x256xf32>
    %45 = vector.shape_cast %44 : vector<1x8x256xf32> to vector<8x256xf32>
    %c56 = arith.constant 56 : index
    %c0_46 = arith.constant 0 : index
    %46 = vector.load %arg11[%c56, %c0_46] : memref<72x512xf32, #tpu.memory_space<vmem>>, vector<8x256xf32>
    tpu.vector_store %arg11[%c56, %c0_46], %45 {strides = array<i32>} : memref<72x512xf32, #tpu.memory_space<vmem>>, vector<8x256xf32>,
    %c2_47 = arith.constant 2 : index
    %c0_48 = arith.constant 0 : index
    %c145 = arith.constant 145 : index
    %47 = vector.load %arg10[%c2_47, %c0_48, %c145] : memref<3x8x512xf32, #tpu.memory_space<vmem>>, vector<1x8x256xf32>
    %48 = vector.shape_cast %47 : vector<1x8x256xf32> to vector<8x256xf32>
    %c64 = arith.constant 64 : index
    %c0_49 = arith.constant 0 : index
    %49 = vector.load %arg11[%c64, %c0_49] : memref<72x512xf32, #tpu.memory_space<vmem>>, vector<8x256xf32>
    tpu.vector_store %arg11[%c64, %c0_49], %48 {strides = array<i32>} : memref<72x512xf32, #tpu.memory_space<vmem>>, vector<8x256xf32>,
    %50 = vector.broadcast %5 : vector<1x256xf32> to vector<8x256xf32>
    %51 = arith.mulf %9, %50 : vector<8x256xf32>
    %c0_50 = arith.constant 0 : index
    %c0_51 = arith.constant 0 : index
    %c128_52 = arith.constant 128 : index
    %52 = vector.load %arg10[%c0_50, %c0_51, %c128_52] : memref<3x8x512xf32, #tpu.memory_space<vmem>>, vector<1x8x256xf32>
    %53 = vector.shape_cast %52 : vector<1x8x256xf32> to vector<8x256xf32>
    %54 = vector.shape_cast %51 : vector<8x256xf32> to vector<1x8x256xf32>
    tpu.vector_store %arg10[%c0_50, %c0_51, %c128_52], %54 {strides = array<i32>} : memref<3x8x512xf32, #tpu.memory_space<vmem>>, vector<1x8x256xf32>,
    %c1_53 = arith.constant 1 : index
    %c0_54 = arith.constant 0 : index
    %c128_55 = arith.constant 128 : index
    %55 = vector.load %arg10[%c1_53, %c0_54, %c128_55] : memref<3x8x512xf32, #tpu.memory_space<vmem>>, vector<1x8x256xf32>
    %56 = vector.shape_cast %55 : vector<1x8x256xf32> to vector<8x256xf32>
    %57 = vector.shape_cast %9 : vector<8x256xf32> to vector<1x8x256xf32>
    tpu.vector_store %arg10[%c1_53, %c0_54, %c128_55], %57 {strides = array<i32>} : memref<3x8x512xf32, #tpu.memory_space<vmem>>, vector<1x8x256xf32>,
    %58 = vector.broadcast %4 : vector<1x256xf32> to vector<8x256xf32>
    %59 = arith.mulf %9, %58 : vector<8x256xf32>
    %c2_56 = arith.constant 2 : index
    %c0_57 = arith.constant 0 : index
    %c128_58 = arith.constant 128 : index
    %60 = vector.load %arg10[%c2_56, %c0_57, %c128_58] : memref<3x8x512xf32, #tpu.memory_space<vmem>>, vector<1x8x256xf32>
    %61 = vector.shape_cast %60 : vector<1x8x256xf32> to vector<8x256xf32>
    %62 = vector.shape_cast %59 : vector<8x256xf32> to vector<1x8x256xf32>
    tpu.vector_store %arg10[%c2_56, %c0_57, %c128_58], %62 {strides = array<i32>} : memref<3x8x512xf32, #tpu.memory_space<vmem>>, vector<1x8x256xf32>,
    %c0_59 = arith.constant 0 : index
    %c0_60 = arith.constant 0 : index
    %c111_61 = arith.constant 111 : index
    %63 = vector.load %arg10[%c0_59, %c0_60, %c111_61] : memref<3x8x512xf32, #tpu.memory_space<vmem>>, vector<1x8x256xf32>
    %64 = vector.shape_cast %63 : vector<1x8x256xf32> to vector<8x256xf32>
    %c0_62 = arith.constant 0 : index
    %c256 = arith.constant 256 : index
    %65 = vector.load %arg11[%c0_62, %c256] : memref<72x512xf32, #tpu.memory_space<vmem>>, vector<8x256xf32>
    tpu.vector_store %arg11[%c0_62, %c256], %64 {strides = array<i32>} : memref<72x512xf32, #tpu.memory_space<vmem>>, vector<8x256xf32>,
    %c1_63 = arith.constant 1 : index
    %c0_64 = arith.constant 0 : index
    %c112_65 = arith.constant 112 : index
    %66 = vector.load %arg10[%c1_63, %c0_64, %c112_65] : memref<3x8x512xf32, #tpu.memory_space<vmem>>, vector<1x8x256xf32>
    %67 = vector.shape_cast %66 : vector<1x8x256xf32> to vector<8x256xf32>
    %c8_66 = arith.constant 8 : index
    %c256_67 = arith.constant 256 : index
    %68 = vector.load %arg11[%c8_66, %c256_67] : memref<72x512xf32, #tpu.memory_space<vmem>>, vector<8x256xf32>
    tpu.vector_store %arg11[%c8_66, %c256_67], %67 {strides = array<i32>} : memref<72x512xf32, #tpu.memory_space<vmem>>, vector<8x256xf32>,
    %c2_68 = arith.constant 2 : index
    %c0_69 = arith.constant 0 : index
    %c113_70 = arith.constant 113 : index
    %69 = vector.load %arg10[%c2_68, %c0_69, %c113_70] : memref<3x8x512xf32, #tpu.memory_space<vmem>>, vector<1x8x256xf32>
    %70 = vector.shape_cast %69 : vector<1x8x256xf32> to vector<8x256xf32>
    %c16_71 = arith.constant 16 : index
    %c256_72 = arith.constant 256 : index
    %71 = vector.load %arg11[%c16_71, %c256_72] : memref<72x512xf32, #tpu.memory_space<vmem>>, vector<8x256xf32>
    tpu.vector_store %arg11[%c16_71, %c256_72], %70 {strides = array<i32>} : memref<72x512xf32, #tpu.memory_space<vmem>>, vector<8x256xf32>,
    %c0_73 = arith.constant 0 : index
    %c0_74 = arith.constant 0 : index
    %c127_75 = arith.constant 127 : index
    %72 = vector.load %arg10[%c0_73, %c0_74, %c127_75] : memref<3x8x512xf32, #tpu.memory_space<vmem>>, vector<1x8x256xf32>
    %73 = vector.shape_cast %72 : vector<1x8x256xf32> to vector<8x256xf32>
    %c24_76 = arith.constant 24 : index
    %c256_77 = arith.constant 256 : index
    %74 = vector.load %arg11[%c24_76, %c256_77] : memref<72x512xf32, #tpu.memory_space<vmem>>, vector<8x256xf32>
    tpu.vector_store %arg11[%c24_76, %c256_77], %73 {strides = array<i32>} : memref<72x512xf32, #tpu.memory_space<vmem>>, vector<8x256xf32>,
    %c1_78 = arith.constant 1 : index
    %c0_79 = arith.constant 0 : index
    %c128_80 = arith.constant 128 : index
    %75 = vector.load %arg10[%c1_78, %c0_79, %c128_80] : memref<3x8x512xf32, #tpu.memory_space<vmem>>, vector<1x8x256xf32>
    %76 = vector.shape_cast %75 : vector<1x8x256xf32> to vector<8x256xf32>
    %c32_81 = arith.constant 32 : index
    %c256_82 = arith.constant 256 : index
    %77 = vector.load %arg11[%c32_81, %c256_82] : memref<72x512xf32, #tpu.memory_space<vmem>>, vector<8x256xf32>
    tpu.vector_store %arg11[%c32_81, %c256_82], %76 {strides = array<i32>} : memref<72x512xf32, #tpu.memory_space<vmem>>, vector<8x256xf32>,
    %c2_83 = arith.constant 2 : index
    %c0_84 = arith.constant 0 : index
    %c129_85 = arith.constant 129 : index
    %78 = vector.load %arg10[%c2_83, %c0_84, %c129_85] : memref<3x8x512xf32, #tpu.memory_space<vmem>>, vector<1x8x256xf32>
    %79 = vector.shape_cast %78 : vector<1x8x256xf32> to vector<8x256xf32>
    %c40_86 = arith.constant 40 : index
    %c256_87 = arith.constant 256 : index
    %80 = vector.load %arg11[%c40_86, %c256_87] : memref<72x512xf32, #tpu.memory_space<vmem>>, vector<8x256xf32>
    tpu.vector_store %arg11[%c40_86, %c256_87], %79 {strides = array<i32>} : memref<72x512xf32, #tpu.memory_space<vmem>>, vector<8x256xf32>,
    %c0_88 = arith.constant 0 : index
    %c0_89 = arith.constant 0 : index
    %c143_90 = arith.constant 143 : index
    %81 = vector.load %arg10[%c0_88, %c0_89, %c143_90] : memref<3x8x512xf32, #tpu.memory_space<vmem>>, vector<1x8x256xf32>
    %82 = vector.shape_cast %81 : vector<1x8x256xf32> to vector<8x256xf32>
    %c48_91 = arith.constant 48 : index
    %c256_92 = arith.constant 256 : index
    %83 = vector.load %arg11[%c48_91, %c256_92] : memref<72x512xf32, #tpu.memory_space<vmem>>, vector<8x256xf32>
    tpu.vector_store %arg11[%c48_91, %c256_92], %82 {strides = array<i32>} : memref<72x512xf32, #tpu.memory_space<vmem>>, vector<8x256xf32>,
    %c1_93 = arith.constant 1 : index
    %c0_94 = arith.constant 0 : index
    %c144_95 = arith.constant 144 : index
    %84 = vector.load %arg10[%c1_93, %c0_94, %c144_95] : memref<3x8x512xf32, #tpu.memory_space<vmem>>, vector<1x8x256xf32>
    %85 = vector.shape_cast %84 : vector<1x8x256xf32> to vector<8x256xf32>
    %c56_96 = arith.constant 56 : index
    %c256_97 = arith.constant 256 : index
    %86 = vector.load %arg11[%c56_96, %c256_97] : memref<72x512xf32, #tpu.memory_space<vmem>>, vector<8x256xf32>
    tpu.vector_store %arg11[%c56_96, %c256_97], %85 {strides = array<i32>} : memref<72x512xf32, #tpu.memory_space<vmem>>, vector<8x256xf32>,
    %c2_98 = arith.constant 2 : index
    %c0_99 = arith.constant 0 : index
    %c145_100 = arith.constant 145 : index
    %87 = vector.load %arg10[%c2_98, %c0_99, %c145_100] : memref<3x8x512xf32, #tpu.memory_space<vmem>>, vector<1x8x256xf32>
    %88 = vector.shape_cast %87 : vector<1x8x256xf32> to vector<8x256xf32>
    %c64_101 = arith.constant 64 : index
    %c256_102 = arith.constant 256 : index
    %89 = vector.load %arg11[%c64_101, %c256_102] : memref<72x512xf32, #tpu.memory_space<vmem>>, vector<8x256xf32>
    tpu.vector_store %arg11[%c64_101, %c256_102], %88 {strides = array<i32>} : memref<72x512xf32, #tpu.memory_space<vmem>>, vector<8x256xf32>,
    %c0_103 = arith.constant 0 : index
    %c0_104 = arith.constant 0 : index
    %90 = vector.load %arg1[%c0_103, %c0_104] : memref<8x72xf32, #tpu.memory_space<vmem>>, vector<8x72xf32>
    %c0_105 = arith.constant 0 : index
    %c0_106 = arith.constant 0 : index
    %91 = vector.load %arg11[%c0_105, %c0_106] : memref<72x512xf32, #tpu.memory_space<vmem>>, vector<72x512xf32>
    %cst_107 = arith.constant dense<0.000000e+00> : vector<8x512xf32>
    %92 = tpu.matmul %90, %91, %cst_107 {dimension_numbers = #tpu.dot_dimension_numbers<[1], [0], [0], [1], [0, 0, 1, 1], [], []>} : vector<8x72xf32>, vector<72x512xf32>, vector<8x512xf32> -> vector<8x512xf32>
    %cst_108 = arith.constant dense<0.000000e+00> : vector<8xf32>
    %93 = vector.multi_reduction <add>, %92, %cst_108 [1] : vector<8x512xf32> to vector<8xf32>
    %94 = vector.shape_cast %93 : vector<8xf32> to vector<8x1xf32>
    %95 = arith.mulf %92, %92 : vector<8x512xf32>
    %cst_109 = arith.constant dense<0.000000e+00> : vector<8xf32>
    %96 = vector.multi_reduction <add>, %95, %cst_109 [1] : vector<8x512xf32> to vector<8xf32>
    %97 = vector.shape_cast %96 : vector<8xf32> to vector<8x1xf32>
    %cst_110 = arith.constant 0.001953125 : f32
    %98 = vector.broadcast %cst_110 : f32 to vector<8x1xf32>
    %99 = arith.mulf %94, %98 : vector<8x1xf32>
    %cst_111 = arith.constant 0.001953125 : f32
    %100 = vector.broadcast %cst_111 : f32 to vector<8x1xf32>
    %101 = arith.mulf %97, %100 : vector<8x1xf32>
    %102 = arith.mulf %99, %99 : vector<8x1xf32>
    %103 = arith.subf %101, %102 : vector<8x1xf32>
    %cst_112 = arith.constant 0.000000e+00 : f32
    %104 = vector.broadcast %cst_112 : f32 to vector<8x1xf32>
    %105 = arith.maximumf %103, %104 : vector<8x1xf32>
    %c0_113 = arith.constant 0 : index
    %c0_114 = arith.constant 0 : index
    %106 = vector.load %arg3[%c0_113, %c0_114] : memref<8x1xf32, #tpu.memory_space<vmem>>, vector<8x1xf32>
    %cst_115 = arith.constant 9.99999974E-6 : f32
    %107 = vector.broadcast %cst_115 : f32 to vector<8x1xf32>
    %108 = arith.addf %105, %107 : vector<8x1xf32>
    %109 = math.sqrt %108 : vector<8x1xf32>
    %110 = arith.divf %106, %109 : vector<8x1xf32>
    %c0_116 = arith.constant 0 : index
    %c0_117 = arith.constant 0 : index
    %111 = vector.load %arg4[%c0_116, %c0_117] : memref<8x1xf32, #tpu.memory_space<vmem>>, vector<8x1xf32>
    %112 = arith.mulf %99, %110 : vector<8x1xf32>
    %113 = arith.subf %111, %112 : vector<8x1xf32>
    %114 = vector.broadcast %110 : vector<8x1xf32> to vector<8x512xf32>
    %115 = arith.mulf %92, %114 : vector<8x512xf32>
    %116 = vector.broadcast %113 : vector<8x1xf32> to vector<8x512xf32>
    %117 = arith.addf %115, %116 : vector<8x512xf32>
    %cst_118 = arith.constant 0.000000e+00 : f32
    %118 = vector.broadcast %cst_118 : f32 to vector<8x512xf32>
    %119 = arith.cmpf oge, %117, %118 : vector<8x512xf32>
    %cst_119 = arith.constant 2.000000e-01 : f32
    %120 = vector.broadcast %cst_119 : f32 to vector<8x512xf32>
    %121 = arith.mulf %120, %117 : vector<8x512xf32>
    %122 = arith.select %119, %117, %121 : vector<8x512xi1>, vector<8x512xf32>
    %123 = vector.extract_strided_slice %122 {offsets = [0, 0], sizes = [8, 256], strides = [1, 1]} : vector<8x512xf32> to vector<8x256xf32>
    %124 = vector.extract_strided_slice %122 {offsets = [0, 256], sizes = [8, 256], strides = [1, 1]} : vector<8x512xf32> to vector<8x256xf32>
    %125 = vector.broadcast %5 : vector<1x256xf32> to vector<8x256xf32>
    %126 = arith.mulf %123, %125 : vector<8x256xf32>
    %c0_120 = arith.constant 0 : index
    %c0_121 = arith.constant 0 : index
    %c128_122 = arith.constant 128 : index
    %127 = vector.load %arg10[%c0_120, %c0_121, %c128_122] : memref<3x8x512xf32, #tpu.memory_space<vmem>>, vector<1x8x256xf32>
    %128 = vector.shape_cast %127 : vector<1x8x256xf32> to vector<8x256xf32>
    %129 = vector.shape_cast %126 : vector<8x256xf32> to vector<1x8x256xf32>
    tpu.vector_store %arg10[%c0_120, %c0_121, %c128_122], %129 {strides = array<i32>} : memref<3x8x512xf32, #tpu.memory_space<vmem>>, vector<1x8x256xf32>,
    %c1_123 = arith.constant 1 : index
    %c0_124 = arith.constant 0 : index
    %c128_125 = arith.constant 128 : index
    %130 = vector.load %arg10[%c1_123, %c0_124, %c128_125] : memref<3x8x512xf32, #tpu.memory_space<vmem>>, vector<1x8x256xf32>
    %131 = vector.shape_cast %130 : vector<1x8x256xf32> to vector<8x256xf32>
    %132 = vector.shape_cast %123 : vector<8x256xf32> to vector<1x8x256xf32>
    tpu.vector_store %arg10[%c1_123, %c0_124, %c128_125], %132 {strides = array<i32>} : memref<3x8x512xf32, #tpu.memory_space<vmem>>, vector<1x8x256xf32>,
    %133 = vector.broadcast %4 : vector<1x256xf32> to vector<8x256xf32>
    %134 = arith.mulf %123, %133 : vector<8x256xf32>
    %c2_126 = arith.constant 2 : index
    %c0_127 = arith.constant 0 : index
    %c128_128 = arith.constant 128 : index
    %135 = vector.load %arg10[%c2_126, %c0_127, %c128_128] : memref<3x8x512xf32, #tpu.memory_space<vmem>>, vector<1x8x256xf32>
    %136 = vector.shape_cast %135 : vector<1x8x256xf32> to vector<8x256xf32>
    %137 = vector.shape_cast %134 : vector<8x256xf32> to vector<1x8x256xf32>
    tpu.vector_store %arg10[%c2_126, %c0_127, %c128_128], %137 {strides = array<i32>} : memref<3x8x512xf32, #tpu.memory_space<vmem>>, vector<1x8x256xf32>,
    %c0_129 = arith.constant 0 : index
    %c0_130 = arith.constant 0 : index
    %c111_131 = arith.constant 111 : index
    %138 = vector.load %arg10[%c0_129, %c0_130, %c111_131] : memref<3x8x512xf32, #tpu.memory_space<vmem>>, vector<1x8x256xf32>
    %139 = vector.shape_cast %138 : vector<1x8x256xf32> to vector<8x256xf32>
    %c0_132 = arith.constant 0 : index
    %c0_133 = arith.constant 0 : index
    %140 = vector.load %arg11[%c0_132, %c0_133] : memref<72x512xf32, #tpu.memory_space<vmem>>, vector<8x256xf32>
    tpu.vector_store %arg11[%c0_132, %c0_133], %139 {strides = array<i32>} : memref<72x512xf32, #tpu.memory_space<vmem>>, vector<8x256xf32>,
    %c1_134 = arith.constant 1 : index
    %c0_135 = arith.constant 0 : index
    %c112_136 = arith.constant 112 : index
    %141 = vector.load %arg10[%c1_134, %c0_135, %c112_136] : memref<3x8x512xf32, #tpu.memory_space<vmem>>, vector<1x8x256xf32>
    %142 = vector.shape_cast %141 : vector<1x8x256xf32> to vector<8x256xf32>
    %c8_137 = arith.constant 8 : index
    %c0_138 = arith.constant 0 : index
    %143 = vector.load %arg11[%c8_137, %c0_138] : memref<72x512xf32, #tpu.memory_space<vmem>>, vector<8x256xf32>
    tpu.vector_store %arg11[%c8_137, %c0_138], %142 {strides = array<i32>} : memref<72x512xf32, #tpu.memory_space<vmem>>, vector<8x256xf32>,
    %c2_139 = arith.constant 2 : index
    %c0_140 = arith.constant 0 : index
    %c113_141 = arith.constant 113 : index
    %144 = vector.load %arg10[%c2_139, %c0_140, %c113_141] : memref<3x8x512xf32, #tpu.memory_space<vmem>>, vector<1x8x256xf32>
    %145 = vector.shape_cast %144 : vector<1x8x256xf32> to vector<8x256xf32>
    %c16_142 = arith.constant 16 : index
    %c0_143 = arith.constant 0 : index
    %146 = vector.load %arg11[%c16_142, %c0_143] : memref<72x512xf32, #tpu.memory_space<vmem>>, vector<8x256xf32>
    tpu.vector_store %arg11[%c16_142, %c0_143], %145 {strides = array<i32>} : memref<72x512xf32, #tpu.memory_space<vmem>>, vector<8x256xf32>,
    %c0_144 = arith.constant 0 : index
    %c0_145 = arith.constant 0 : index
    %c127_146 = arith.constant 127 : index
    %147 = vector.load %arg10[%c0_144, %c0_145, %c127_146] : memref<3x8x512xf32, #tpu.memory_space<vmem>>, vector<1x8x256xf32>
    %148 = vector.shape_cast %147 : vector<1x8x256xf32> to vector<8x256xf32>
    %c24_147 = arith.constant 24 : index
    %c0_148 = arith.constant 0 : index
    %149 = vector.load %arg11[%c24_147, %c0_148] : memref<72x512xf32, #tpu.memory_space<vmem>>, vector<8x256xf32>
    tpu.vector_store %arg11[%c24_147, %c0_148], %148 {strides = array<i32>} : memref<72x512xf32, #tpu.memory_space<vmem>>, vector<8x256xf32>,
    %c1_149 = arith.constant 1 : index
    %c0_150 = arith.constant 0 : index
    %c128_151 = arith.constant 128 : index
    %150 = vector.load %arg10[%c1_149, %c0_150, %c128_151] : memref<3x8x512xf32, #tpu.memory_space<vmem>>, vector<1x8x256xf32>
    %151 = vector.shape_cast %150 : vector<1x8x256xf32> to vector<8x256xf32>
    %c32_152 = arith.constant 32 : index
    %c0_153 = arith.constant 0 : index
    %152 = vector.load %arg11[%c32_152, %c0_153] : memref<72x512xf32, #tpu.memory_space<vmem>>, vector<8x256xf32>
    tpu.vector_store %arg11[%c32_152, %c0_153], %151 {strides = array<i32>} : memref<72x512xf32, #tpu.memory_space<vmem>>, vector<8x256xf32>,
    %c2_154 = arith.constant 2 : index
    %c0_155 = arith.constant 0 : index
    %c129_156 = arith.constant 129 : index
    %153 = vector.load %arg10[%c2_154, %c0_155, %c129_156] : memref<3x8x512xf32, #tpu.memory_space<vmem>>, vector<1x8x256xf32>
    %154 = vector.shape_cast %153 : vector<1x8x256xf32> to vector<8x256xf32>
    %c40_157 = arith.constant 40 : index
    %c0_158 = arith.constant 0 : index
    %155 = vector.load %arg11[%c40_157, %c0_158] : memref<72x512xf32, #tpu.memory_space<vmem>>, vector<8x256xf32>
    tpu.vector_store %arg11[%c40_157, %c0_158], %154 {strides = array<i32>} : memref<72x512xf32, #tpu.memory_space<vmem>>, vector<8x256xf32>,
    %c0_159 = arith.constant 0 : index
    %c0_160 = arith.constant 0 : index
    %c143_161 = arith.constant 143 : index
    %156 = vector.load %arg10[%c0_159, %c0_160, %c143_161] : memref<3x8x512xf32, #tpu.memory_space<vmem>>, vector<1x8x256xf32>
    %157 = vector.shape_cast %156 : vector<1x8x256xf32> to vector<8x256xf32>
    %c48_162 = arith.constant 48 : index
    %c0_163 = arith.constant 0 : index
    %158 = vector.load %arg11[%c48_162, %c0_163] : memref<72x512xf32, #tpu.memory_space<vmem>>, vector<8x256xf32>
    tpu.vector_store %arg11[%c48_162, %c0_163], %157 {strides = array<i32>} : memref<72x512xf32, #tpu.memory_space<vmem>>, vector<8x256xf32>,
    %c1_164 = arith.constant 1 : index
    %c0_165 = arith.constant 0 : index
    %c144_166 = arith.constant 144 : index
    %159 = vector.load %arg10[%c1_164, %c0_165, %c144_166] : memref<3x8x512xf32, #tpu.memory_space<vmem>>, vector<1x8x256xf32>
    %160 = vector.shape_cast %159 : vector<1x8x256xf32> to vector<8x256xf32>
    %c56_167 = arith.constant 56 : index
    %c0_168 = arith.constant 0 : index
    %161 = vector.load %arg11[%c56_167, %c0_168] : memref<72x512xf32, #tpu.memory_space<vmem>>, vector<8x256xf32>
    tpu.vector_store %arg11[%c56_167, %c0_168], %160 {strides = array<i32>} : memref<72x512xf32, #tpu.memory_space<vmem>>, vector<8x256xf32>,
    %c2_169 = arith.constant 2 : index
    %c0_170 = arith.constant 0 : index
    %c145_171 = arith.constant 145 : index
    %162 = vector.load %arg10[%c2_169, %c0_170, %c145_171] : memref<3x8x512xf32, #tpu.memory_space<vmem>>, vector<1x8x256xf32>
    %163 = vector.shape_cast %162 : vector<1x8x256xf32> to vector<8x256xf32>
    %c64_172 = arith.constant 64 : index
    %c0_173 = arith.constant 0 : index
    %164 = vector.load %arg11[%c64_172, %c0_173] : memref<72x512xf32, #tpu.memory_space<vmem>>, vector<8x256xf32>
    tpu.vector_store %arg11[%c64_172, %c0_173], %163 {strides = array<i32>} : memref<72x512xf32, #tpu.memory_space<vmem>>, vector<8x256xf32>,
    %165 = vector.broadcast %5 : vector<1x256xf32> to vector<8x256xf32>
    %166 = arith.mulf %124, %165 : vector<8x256xf32>
    %c0_174 = arith.constant 0 : index
    %c0_175 = arith.constant 0 : index
    %c128_176 = arith.constant 128 : index
    %167 = vector.load %arg10[%c0_174, %c0_175, %c128_176] : memref<3x8x512xf32, #tpu.memory_space<vmem>>, vector<1x8x256xf32>
    %168 = vector.shape_cast %167 : vector<1x8x256xf32> to vector<8x256xf32>
    %169 = vector.shape_cast %166 : vector<8x256xf32> to vector<1x8x256xf32>
    tpu.vector_store %arg10[%c0_174, %c0_175, %c128_176], %169 {strides = array<i32>} : memref<3x8x512xf32, #tpu.memory_space<vmem>>, vector<1x8x256xf32>,
    %c1_177 = arith.constant 1 : index
    %c0_178 = arith.constant 0 : index
    %c128_179 = arith.constant 128 : index
    %170 = vector.load %arg10[%c1_177, %c0_178, %c128_179] : memref<3x8x512xf32, #tpu.memory_space<vmem>>, vector<1x8x256xf32>
    %171 = vector.shape_cast %170 : vector<1x8x256xf32> to vector<8x256xf32>
    %172 = vector.shape_cast %124 : vector<8x256xf32> to vector<1x8x256xf32>
    tpu.vector_store %arg10[%c1_177, %c0_178, %c128_179], %172 {strides = array<i32>} : memref<3x8x512xf32, #tpu.memory_space<vmem>>, vector<1x8x256xf32>,
    %173 = vector.broadcast %4 : vector<1x256xf32> to vector<8x256xf32>
    %174 = arith.mulf %124, %173 : vector<8x256xf32>
    %c2_180 = arith.constant 2 : index
    %c0_181 = arith.constant 0 : index
    %c128_182 = arith.constant 128 : index
    %175 = vector.load %arg10[%c2_180, %c0_181, %c128_182] : memref<3x8x512xf32, #tpu.memory_space<vmem>>, vector<1x8x256xf32>
    %176 = vector.shape_cast %175 : vector<1x8x256xf32> to vector<8x256xf32>
    %177 = vector.shape_cast %174 : vector<8x256xf32> to vector<1x8x256xf32>
    tpu.vector_store %arg10[%c2_180, %c0_181, %c128_182], %177 {strides = array<i32>} : memref<3x8x512xf32, #tpu.memory_space<vmem>>, vector<1x8x256xf32>,
    %c0_183 = arith.constant 0 : index
    %c0_184 = arith.constant 0 : index
    %c111_185 = arith.constant 111 : index
    %178 = vector.load %arg10[%c0_183, %c0_184, %c111_185] : memref<3x8x512xf32, #tpu.memory_space<vmem>>, vector<1x8x256xf32>
    %179 = vector.shape_cast %178 : vector<1x8x256xf32> to vector<8x256xf32>
    %c0_186 = arith.constant 0 : index
    %c256_187 = arith.constant 256 : index
    %180 = vector.load %arg11[%c0_186, %c256_187] : memref<72x512xf32, #tpu.memory_space<vmem>>, vector<8x256xf32>
    tpu.vector_store %arg11[%c0_186, %c256_187], %179 {strides = array<i32>} : memref<72x512xf32, #tpu.memory_space<vmem>>, vector<8x256xf32>,
    %c1_188 = arith.constant 1 : index
    %c0_189 = arith.constant 0 : index
    %c112_190 = arith.constant 112 : index
    %181 = vector.load %arg10[%c1_188, %c0_189, %c112_190] : memref<3x8x512xf32, #tpu.memory_space<vmem>>, vector<1x8x256xf32>
    %182 = vector.shape_cast %181 : vector<1x8x256xf32> to vector<8x256xf32>
    %c8_191 = arith.constant 8 : index
    %c256_192 = arith.constant 256 : index
    %183 = vector.load %arg11[%c8_191, %c256_192] : memref<72x512xf32, #tpu.memory_space<vmem>>, vector<8x256xf32>
    tpu.vector_store %arg11[%c8_191, %c256_192], %182 {strides = array<i32>} : memref<72x512xf32, #tpu.memory_space<vmem>>, vector<8x256xf32>,
    %c2_193 = arith.constant 2 : index
    %c0_194 = arith.constant 0 : index
    %c113_195 = arith.constant 113 : index
    %184 = vector.load %arg10[%c2_193, %c0_194, %c113_195] : memref<3x8x512xf32, #tpu.memory_space<vmem>>, vector<1x8x256xf32>
    %185 = vector.shape_cast %184 : vector<1x8x256xf32> to vector<8x256xf32>
    %c16_196 = arith.constant 16 : index
    %c256_197 = arith.constant 256 : index
    %186 = vector.load %arg11[%c16_196, %c256_197] : memref<72x512xf32, #tpu.memory_space<vmem>>, vector<8x256xf32>
    tpu.vector_store %arg11[%c16_196, %c256_197], %185 {strides = array<i32>} : memref<72x512xf32, #tpu.memory_space<vmem>>, vector<8x256xf32>,
    %c0_198 = arith.constant 0 : index
    %c0_199 = arith.constant 0 : index
    %c127_200 = arith.constant 127 : index
    %187 = vector.load %arg10[%c0_198, %c0_199, %c127_200] : memref<3x8x512xf32, #tpu.memory_space<vmem>>, vector<1x8x256xf32>
    %188 = vector.shape_cast %187 : vector<1x8x256xf32> to vector<8x256xf32>
    %c24_201 = arith.constant 24 : index
    %c256_202 = arith.constant 256 : index
    %189 = vector.load %arg11[%c24_201, %c256_202] : memref<72x512xf32, #tpu.memory_space<vmem>>, vector<8x256xf32>
    tpu.vector_store %arg11[%c24_201, %c256_202], %188 {strides = array<i32>} : memref<72x512xf32, #tpu.memory_space<vmem>>, vector<8x256xf32>,
    %c1_203 = arith.constant 1 : index
    %c0_204 = arith.constant 0 : index
    %c128_205 = arith.constant 128 : index
    %190 = vector.load %arg10[%c1_203, %c0_204, %c128_205] : memref<3x8x512xf32, #tpu.memory_space<vmem>>, vector<1x8x256xf32>
    %191 = vector.shape_cast %190 : vector<1x8x256xf32> to vector<8x256xf32>
    %c32_206 = arith.constant 32 : index
    %c256_207 = arith.constant 256 : index
    %192 = vector.load %arg11[%c32_206, %c256_207] : memref<72x512xf32, #tpu.memory_space<vmem>>, vector<8x256xf32>
    tpu.vector_store %arg11[%c32_206, %c256_207], %191 {strides = array<i32>} : memref<72x512xf32, #tpu.memory_space<vmem>>, vector<8x256xf32>,
    %c2_208 = arith.constant 2 : index
    %c0_209 = arith.constant 0 : index
    %c129_210 = arith.constant 129 : index
    %193 = vector.load %arg10[%c2_208, %c0_209, %c129_210] : memref<3x8x512xf32, #tpu.memory_space<vmem>>, vector<1x8x256xf32>
    %194 = vector.shape_cast %193 : vector<1x8x256xf32> to vector<8x256xf32>
    %c40_211 = arith.constant 40 : index
    %c256_212 = arith.constant 256 : index
    %195 = vector.load %arg11[%c40_211, %c256_212] : memref<72x512xf32, #tpu.memory_space<vmem>>, vector<8x256xf32>
    tpu.vector_store %arg11[%c40_211, %c256_212], %194 {strides = array<i32>} : memref<72x512xf32, #tpu.memory_space<vmem>>, vector<8x256xf32>,
    %c0_213 = arith.constant 0 : index
    %c0_214 = arith.constant 0 : index
    %c143_215 = arith.constant 143 : index
    %196 = vector.load %arg10[%c0_213, %c0_214, %c143_215] : memref<3x8x512xf32, #tpu.memory_space<vmem>>, vector<1x8x256xf32>
    %197 = vector.shape_cast %196 : vector<1x8x256xf32> to vector<8x256xf32>
    %c48_216 = arith.constant 48 : index
    %c256_217 = arith.constant 256 : index
    %198 = vector.load %arg11[%c48_216, %c256_217] : memref<72x512xf32, #tpu.memory_space<vmem>>, vector<8x256xf32>
    tpu.vector_store %arg11[%c48_216, %c256_217], %197 {strides = array<i32>} : memref<72x512xf32, #tpu.memory_space<vmem>>, vector<8x256xf32>,
    %c1_218 = arith.constant 1 : index
    %c0_219 = arith.constant 0 : index
    %c144_220 = arith.constant 144 : index
    %199 = vector.load %arg10[%c1_218, %c0_219, %c144_220] : memref<3x8x512xf32, #tpu.memory_space<vmem>>, vector<1x8x256xf32>
    %200 = vector.shape_cast %199 : vector<1x8x256xf32> to vector<8x256xf32>
    %c56_221 = arith.constant 56 : index
    %c256_222 = arith.constant 256 : index
    %201 = vector.load %arg11[%c56_221, %c256_222] : memref<72x512xf32, #tpu.memory_space<vmem>>, vector<8x256xf32>
    tpu.vector_store %arg11[%c56_221, %c256_222], %200 {strides = array<i32>} : memref<72x512xf32, #tpu.memory_space<vmem>>, vector<8x256xf32>,
    %c2_223 = arith.constant 2 : index
    %c0_224 = arith.constant 0 : index
    %c145_225 = arith.constant 145 : index
    %202 = vector.load %arg10[%c2_223, %c0_224, %c145_225] : memref<3x8x512xf32, #tpu.memory_space<vmem>>, vector<1x8x256xf32>
    %203 = vector.shape_cast %202 : vector<1x8x256xf32> to vector<8x256xf32>
    %c64_226 = arith.constant 64 : index
    %c256_227 = arith.constant 256 : index
    %204 = vector.load %arg11[%c64_226, %c256_227] : memref<72x512xf32, #tpu.memory_space<vmem>>, vector<8x256xf32>
    tpu.vector_store %arg11[%c64_226, %c256_227], %203 {strides = array<i32>} : memref<72x512xf32, #tpu.memory_space<vmem>>, vector<8x256xf32>,
    %c0_228 = arith.constant 0 : index
    %c0_229 = arith.constant 0 : index
    %205 = vector.load %arg2[%c0_228, %c0_229] : memref<8x72xf32, #tpu.memory_space<vmem>>, vector<8x72xf32>
    %c0_230 = arith.constant 0 : index
    %c0_231 = arith.constant 0 : index
    %206 = vector.load %arg11[%c0_230, %c0_231] : memref<72x512xf32, #tpu.memory_space<vmem>>, vector<72x512xf32>
    %cst_232 = arith.constant dense<0.000000e+00> : vector<8x512xf32>
    %207 = tpu.matmul %205, %206, %cst_232 {dimension_numbers = #tpu.dot_dimension_numbers<[1], [0], [0], [1], [0, 0, 1, 1], [], []>} : vector<8x72xf32>, vector<72x512xf32>, vector<8x512xf32> -> vector<8x512xf32>
    %cst_233 = arith.constant dense<0.000000e+00> : vector<8xf32>
    %208 = vector.multi_reduction <add>, %207, %cst_233 [1] : vector<8x512xf32> to vector<8xf32>
    %209 = vector.shape_cast %208 : vector<8xf32> to vector<8x1xf32>
    %210 = arith.mulf %207, %207 : vector<8x512xf32>
    %cst_234 = arith.constant dense<0.000000e+00> : vector<8xf32>
    %211 = vector.multi_reduction <add>, %210, %cst_234 [1] : vector<8x512xf32> to vector<8xf32>
    %212 = vector.shape_cast %211 : vector<8xf32> to vector<8x1xf32>
    %cst_235 = arith.constant 0.001953125 : f32
    %213 = vector.broadcast %cst_235 : f32 to vector<8x1xf32>
    %214 = arith.mulf %209, %213 : vector<8x1xf32>
    %cst_236 = arith.constant 0.001953125 : f32
    %215 = vector.broadcast %cst_236 : f32 to vector<8x1xf32>
    %216 = arith.mulf %212, %215 : vector<8x1xf32>
    %217 = arith.mulf %214, %214 : vector<8x1xf32>
    %218 = arith.subf %216, %217 : vector<8x1xf32>
    %cst_237 = arith.constant 0.000000e+00 : f32
    %219 = vector.broadcast %cst_237 : f32 to vector<8x1xf32>
    %220 = arith.maximumf %218, %219 : vector<8x1xf32>
    %c0_238 = arith.constant 0 : index
    %c0_239 = arith.constant 0 : index
    %221 = vector.load %arg5[%c0_238, %c0_239] : memref<8x1xf32, #tpu.memory_space<vmem>>, vector<8x1xf32>
    %cst_240 = arith.constant 9.99999974E-6 : f32
    %222 = vector.broadcast %cst_240 : f32 to vector<8x1xf32>
    %223 = arith.addf %220, %222 : vector<8x1xf32>
    %224 = math.sqrt %223 : vector<8x1xf32>
    %225 = arith.divf %221, %224 : vector<8x1xf32>
    %c0_241 = arith.constant 0 : index
    %c0_242 = arith.constant 0 : index
    %226 = vector.load %arg6[%c0_241, %c0_242] : memref<8x1xf32, #tpu.memory_space<vmem>>, vector<8x1xf32>
    %227 = arith.mulf %214, %225 : vector<8x1xf32>
    %228 = arith.subf %226, %227 : vector<8x1xf32>
    %229 = vector.broadcast %225 : vector<8x1xf32> to vector<8x512xf32>
    %230 = arith.mulf %207, %229 : vector<8x512xf32>
    %231 = vector.broadcast %228 : vector<8x1xf32> to vector<8x512xf32>
    %232 = arith.addf %230, %231 : vector<8x512xf32>
    %233 = vector.extract_strided_slice %232 {offsets = [0, 0], sizes = [8, 256], strides = [1, 1]} : vector<8x512xf32> to vector<8x256xf32>
    %234 = arith.addf %7, %233 : vector<8x256xf32>
    %c0_243 = arith.constant 0 : index
    %c0_244 = arith.constant 0 : index
    %c0_245 = arith.constant 0 : index
    %235 = vector.load %arg9[%c0_243, %c0_244, %c0_245] : memref<2x8x256xf32, #tpu.memory_space<vmem>>, vector<1x8x256xf32>
    %236 = vector.shape_cast %235 : vector<1x8x256xf32> to vector<8x256xf32>
    %237 = vector.shape_cast %234 : vector<8x256xf32> to vector<1x8x256xf32>
    tpu.vector_store %arg9[%c0_243, %c0_244, %c0_245], %237 {strides = array<i32>} : memref<2x8x256xf32, #tpu.memory_space<vmem>>, vector<1x8x256xf32>,
    %238 = vector.extract_strided_slice %232 {offsets = [0, 256], sizes = [8, 256], strides = [1, 1]} : vector<8x512xf32> to vector<8x256xf32>
    %239 = arith.addf %9, %238 : vector<8x256xf32>
    %c1_246 = arith.constant 1 : index
    %c0_247 = arith.constant 0 : index
    %c0_248 = arith.constant 0 : index
    %240 = vector.load %arg9[%c1_246, %c0_247, %c0_248] : memref<2x8x256xf32, #tpu.memory_space<vmem>>, vector<1x8x256xf32>
    %241 = vector.shape_cast %240 : vector<1x8x256xf32> to vector<8x256xf32>
    %242 = vector.shape_cast %239 : vector<8x256xf32> to vector<1x8x256xf32>
    tpu.vector_store %arg9[%c1_246, %c0_247, %c0_248], %242 {strides = array<i32>} : memref<2x8x256xf32, #tpu.memory_space<vmem>>, vector<1x8x256xf32>,
    return
  }
}

</mosaic_0001>

<bundles_post_ra>
// kernel: resblock_forward.1
= control target key start
LH: loop header
LB: loop body
LE: loop exit
PB: predicated region body
PF: predicated region fallthrough
CT: control target
= control target key end

     0   :  { %v46_v0 = vlaneseq  ;;  %v1301_v2 = vmov 0.0   ;;  %s1302_s11 = smov 112   ;;  %s1303_s12 = smov 111   ;;  %vm228_vm0 = vcmask 908288   ;;  %vm209_vm1 = vcmask 916480   ;;  %s1706_s0 = inlined_call_operand.vmem [shape: f32[2,8,256], index: 0, kind: input, shape index: {}]   ;;  %s1707_s7 = inlined_call_operand.vmem [shape: f32[1,256], index: 7, kind: input, shape index: {}]   ;;  %s1708_s8 = inlined_call_operand.vmem [shape: f32[1,256], index: 8, kind: input, shape index: {}]   ;;  %s1709_s1 = inlined_call_operand.vmem [shape: f32[8,72], index: 1, kind: input, shape index: {}]   ;;  %s1710_s3 = inlined_call_operand.vmem [shape: f32[8,1], index: 3, kind: input, shape index: {}]   ;;  %s1711_s4 = inlined_call_operand.vmem [shape: f32[8,1], index: 4, kind: input, shape index: {}]   ;;  %s1712_s2 = inlined_call_operand.vmem [shape: f32[8,72], index: 2, kind: input, shape index: {}]   ;;  %s1713_s5 = inlined_call_operand.vmem [shape: f32[8,1], index: 5, kind: input, shape index: {}]   ;;  %s1714_s6 = inlined_call_operand.vmem [shape: f32[8,1], index: 6, kind: input, shape index: {}]   ;;  %s1715_s9 = inlined_call_operand.vmem [shape: f32[2,8,256], index: 9, kind: output, shape index: {}]  }
   0x1   :  { %v1364_v1 = vld [vmem:[%s1706_s0 + $0x8] sm:$0xff]  ;;  %498 = vmatprep.mubr.f32.mxu0 %v1301_v2  ;;  %569 = vmatprep.mubr.f32.mxu1 %v1301_v2  ;;  %v1375_v4 = vld [vmem:[%s1706_s0] sm:$0xff]  ;;  %v1406_v16 = vld [vmem:[%s1706_s0 + $0x18] sm:$0xff]  ;;  %s1304_s19 = smov 113   ;;  %s1305_s22 = smov 127   ;;  %vm190_vm2 = vcmask 924672  }
   0x2   :  { %205 = vrot.lane.b32.xlu1 %v1364_v1, %s1302_s11  ;;  %v47_v3 = vshrl.u32 %v46_v0, 7  ;;  %1220 = vrot.lane.b32.xlu0 %v1301_v2, %s1303_s12  ;;  %v38_v5 = vld [vmem:[%s1707_s7] sm:$0x3]  ;;  %v1418_v19 = vld [vmem:[%s1706_s0 + $0x10] sm:$0xff]  ;;  %s1306_s23 = smov 1   ;;  %s1307_s24 = smov 15  }
   0x3   :  { %v39_v8 = vld [vmem:[%s1708_s8] sm:$0x3]  ;;  %s1308_s25 = smov 16   ;;  %s1309_s26 = smov 17   ;;  %vm171_vm3 = vcmask 1039360   ;;  %vm148_vm4 = vcmask 7168  }
   0x4   :  { %v48_v6 = vsub.s32 0, %v47_v3  ;;  %v52_v7 = vsub.s32 1, %v47_v3  ;;  %vm129_vm5 = vcmask 121856   ;;  %vm110_vm6 = vcmask 130048  }
   0x5   :  { %vm91_vm7 = vcmask 138240   ;;  %vm430_vm8 = vcmask 588800  }
   0x6   :  { %203 = vrot.lane.b32.xlu1 %v1375_v4, %s1302_s11  ;;  %v1385_v9 = vrot.slane %v38_v5, %v48_v6  ;;  %v1387_v10 = vrot.slane %v38_v5, %v52_v7  ;;  %1225 = vrot.lane.b32.xlu0 %v1301_v2, %s1302_s11  ;;  %v1391_v11 = vrot.slane %v39_v8, %v52_v7 }
   0x7   :  { %v1398_v14 = vrot.slane %v39_v8, %v48_v6 }
   0x8   :  { %v74_v12 = vmul.f32 %v1385_v9, %v1375_v4  ;;  %v75_v13 = vmul.f32 %v1387_v10, %v1364_v1  ;;  %v57_v15 = vmul.f32 %v1391_v11, %v1364_v1  ;;  %v242_v18 = vmul.f32 %v1406_v16, %v1387_v10 }
   0x9   :  { %v56_v17 = vmul.f32 %v1398_v14, %v1375_v4  ;;  %v241_v20 = vmul.f32 %v1418_v19, %v1385_v9  ;;  %v235_v21 = vmul.f32 %v1418_v19, %v1398_v14  ;;  %v236_v22 = vmul.f32 %v1406_v16, %v1391_v11 }
   0xa   :  { %222 = vrot.lane.b32.xlu1 %v74_v12, %s1303_s12  ;;  %224 = vrot.lane.b32.xlu0 %v75_v13, %s1303_s12 }
   0xe   :  { %1230 = vrot.lane.b32.xlu1 %v1301_v2, %s1304_s19  ;;  %186 = vrot.lane.b32.xlu0 %v57_v15, %s1304_s19 }
  0x12   :  { %184 = vrot.lane.b32.xlu1 %v56_v17, %s1304_s19  ;;  %383 = vrot.lane.b32.xlu0 %v242_v18, %s1303_s12 }
  0x16   :  { %167 = vrot.lane.b32.xlu1 %v75_v13, %s1305_s22  ;;  %381 = vrot.lane.b32.xlu0 %v241_v20, %s1303_s12 }
  0x1a   :  { %365 = vrot.lane.b32.xlu1 %v1406_v16, %s1302_s11  ;;  %1235 = vrot.lane.b32.xlu0 %v1301_v2, %s1305_s22 }
  0x1e   :  { %363 = vrot.lane.b32.xlu1 %v1418_v19, %s1302_s11  ;;  %165 = vrot.lane.b32.xlu0 %v74_v12, %s1305_s22 }
  0x22   :  { %345 = vrot.lane.b32.xlu1 %v235_v21, %s1304_s19  ;;  %347 = vrot.lane.b32.xlu0 %v236_v22, %s1304_s19 }
  0x26   :  { %146 = vrot.lane.b32.xlu1 %v57_v15, %s1306_s23  ;;  %144 = vrot.lane.b32.xlu0 %v56_v17, %s1306_s23 }
  0x2a   :  { %1240 = vrot.lane.b32.xlu1 %v1301_v2, %s1306_s23  ;;  %329 = vrot.lane.b32.xlu0 %v242_v18, %s1305_s22 }
  0x2e   :  { %125 = vrot.lane.b32.xlu1 %v74_v12, %s1307_s24  ;;  %327 = vrot.lane.b32.xlu0 %v241_v20, %s1305_s22 }
  0x32   :  { %1245 = vrot.lane.b32.xlu1 %v1301_v2, %s1307_s24  ;;  %127 = vrot.lane.b32.xlu0 %v75_v13, %s1307_s24 }
  0x36   :  { %108 = vrot.lane.b32.xlu1 %v1364_v1, %s1308_s25  ;;  %106 = vrot.lane.b32.xlu0 %v1375_v4, %s1308_s25 }
  0x3a   :  { %309 = vrot.lane.b32.xlu1 %v236_v22, %s1306_s23  ;;  %307 = vrot.lane.b32.xlu0 %v235_v21, %s1306_s23 }
  0x3e   :  { %87 = vrot.lane.b32.xlu1 %v56_v17, %s1309_s26  ;;  %1250 = vrot.lane.b32.xlu0 %v1301_v2, %s1308_s25 }
  0x42   :  { %289 = vrot.lane.b32.xlu1 %v241_v20, %s1307_s24  ;;  %89 = vrot.lane.b32.xlu0 %v57_v15, %s1309_s26 }
  0x46   :  { %85 = vrot.lane.b32.xlu1 %v1301_v2, %s1309_s26  ;;  %291 = vrot.lane.b32.xlu0 %v242_v18, %s1307_s24 }
  0x4a   :  { %273 = vrot.lane.b32.xlu1 %v1406_v16, %s1308_s25  ;;  %271 = vrot.lane.b32.xlu0 %v1418_v19, %s1308_s25 }
  0x4e   :  { %255 = vrot.lane.b32.xlu1 %v236_v22, %s1309_s26  ;;  %253 = vrot.lane.b32.xlu0 %v235_v21, %s1309_s26 }
  0x52   :  { %251 = vrot.lane.b32.xlu0 %v1301_v2, %s1309_s26 }
  0x74   :  { %v206_v23 = vpop.permute.xlu1 %205  ;;  %v1221_v24 = vpop.permute.xlu0 %1220 }
  0x75   :  { %v1222_v27 = vunpack.i.l.bf16 %v1221_v24  ;;  %v1223_v39 = vunpack.i.h.bf16 %v1221_v24 }
  0x78   :  { %v204_v25 = vpop.permute.xlu1 %203  ;;  %v1226_v26 = vpop.permute.xlu0 %1225 }
  0x79   :  { %v1227_v28 = vunpack.i.l.bf16 %v1226_v26  ;;  %v210_v37 = vsel %vm209_vm1, %v204_v25, %v206_v23  ;;  %v1228_v47 = vunpack.i.h.bf16 %v1226_v26 }
  0x7b   :  { %v211_v34 = vsel %vm209_vm1, %v206_v23, %v1227_v28 }
  0x7c   :  { %v223_v29 = vpop.permute.xlu1 %222  ;;  %v225_v30 = vpop.permute.xlu0 %224 }
  0x7d   :  { %v230_v31 = vsel %vm228_vm0, %v225_v30, %v1222_v27  ;;  %v229_v32 = vsel %vm228_vm0, %v223_v29, %v225_v30 }
  0x7e   :  { %448 = vmatprep.subr.mxu0 %v230_v31 }
  0x7f   :  { %449 = vmatpush1.msra.mxu0 %v229_v32 }
  0x80   :  { %v1231_v33 = vpop.permute.xlu1 %1230  ;;  %v187_v36 = vpop.permute.xlu0 %186  ;;  %450 = vmatprep.subr.mxu0 %v211_v34 }
  0x81   :  { %v1232_v35 = vunpack.i.l.bf16 %v1231_v33  ;;  %451 = vmatpush1.msra.mxu0 %v210_v37  ;;  %v1233_v57 = vunpack.i.h.bf16 %v1231_v33 }
  0x83   :  { %v192_v38 = vsel %vm190_vm2, %v187_v36, %v1232_v35 }
  0x84   :  { %452 = vmatprep.subr.mxu0 %v192_v38  ;;  %v185_v40 = vpop.permute.xlu1 %184  ;;  %v384_v41 = vpop.permute.xlu0 %383  ;;  %v393_v38 = vld [vmem:[%s1709_s1] sm:$0xff] }
  0x85   :  { %v191_v42 = vsel %vm190_vm2, %v185_v40, %v187_v36  ;;  %v388_v43 = vsel %vm228_vm0, %v384_v41, %v1223_v39 }
  0x86   :  { %453 = vmatpush1.msra.mxu0 %v191_v42  ;;  %519 = vmatprep.subr.mxu1 %v388_v43 }
  0x88   :  { %v168_v44 = vpop.permute.xlu1 %167  ;;  %v382_v45 = vpop.permute.xlu0 %381 }
  0x89   :  { %v387_v46 = vsel %vm228_vm0, %v382_v45, %v384_v41 }
  0x8a   :  { %520 = vmatpush1.msra.mxu1 %v387_v46 }
  0x8c   :  { %v366_v48 = vpop.permute.xlu1 %365  ;;  %v1236_v49 = vpop.permute.xlu0 %1235 }
  0x8d   :  { %v370_v50 = vsel %vm209_vm1, %v366_v48, %v1228_v47  ;;  %v1237_v51 = vunpack.i.l.bf16 %v1236_v49  ;;  %v1238_v3 = vunpack.i.h.bf16 %v1236_v49 }
  0x8e   :  { %521 = vmatprep.subr.mxu1 %v370_v50 }
  0x8f   :  { %v173_v53 = vsel %vm171_vm3, %v168_v44, %v1237_v51 }
  0x90   :  { %v364_v52 = vpop.permute.xlu1 %363  ;;  %v166_v54 = vpop.permute.xlu0 %165  ;;  %454 = vmatprep.subr.mxu0 %v173_v53 }
  0x91   :  { %v369_v55 = vsel %vm209_vm1, %v364_v52, %v366_v48  ;;  %v172_v56 = vsel %vm171_vm3, %v166_v54, %v168_v44 }
  0x92   :  { %522 = vmatpush1.msra.mxu1 %v369_v55  ;;  %455 = vmatpush1.msra.mxu0 %v172_v56 }
  0x93   :  { %456 = vmatprep.subr.mxu0 %v1364_v1 }
  0x94   :  { %v346_v58 = vpop.permute.xlu1 %345  ;;  %v348_v59 = vpop.permute.xlu0 %347  ;;  %457 = vmatpush1.msra.mxu0 %v1375_v4 }
  0x95   :  { %v352_v60 = vsel %vm190_vm2, %v348_v59, %v1233_v57  ;;  %v351_v61 = vsel %vm190_vm2, %v346_v58, %v348_v59 }
  0x96   :  { %523 = vmatprep.subr.mxu1 %v352_v60 }
  0x97   :  { %524 = vmatpush1.msra.mxu1 %v351_v61 }
  0x98   :  { %v147_v62 = vpop.permute.xlu1 %146  ;;  %v145_v63 = vpop.permute.xlu0 %144 }
  0x99   :  { %v150_v0 = vsel %vm148_vm4, %v145_v63, %v147_v62 }
  0x9a   :  { %458 = vmatprep.subr.mxu0 %v150_v0 }
  0x9c   :  { %v1241_v5 = vpop.permute.xlu1 %1240  ;;  %v330_v7 = vpop.permute.xlu0 %329 }
  0x9d   :  { %v1242_v6 = vunpack.i.l.bf16 %v1241_v5  ;;  %v334_v1 = vsel %vm171_vm3, %v330_v7, %v1238_v3  ;;  %v1243_v25 = vunpack.i.h.bf16 %v1241_v5 }
  0x9e   :  { %525 = vmatprep.subr.mxu1 %v334_v1 }
  0x9f   :  { %v149_v4 = vsel %vm148_vm4, %v1242_v6, %v145_v63 }
  0xa0   :  { %v126_v8 = vpop.permute.xlu1 %125  ;;  %459 = vmatpush1.msra.mxu0 %v149_v4  ;;  %v328_v12 = vpop.permute.xlu0 %327 }
  0xa1   :  { %v333_v13 = vsel %vm171_vm3, %v328_v12, %v330_v7  ;;  %v1310_v7 = vmov 0  }
  0xa2   :  { %526 = vmatpush1.msra.mxu1 %v333_v13  ;;  %1254 = vset.pattern.permute.xlu0 %v1310_v7 }
  0xa3   :  { %527 = vmatprep.subr.mxu1 %v1406_v16  ;;  %1260 = vset.pattern.permute.xlu1 %v1310_v7 }
  0xa4   :  { %v1246_v15 = vpop.permute.xlu1 %1245  ;;  %v128_v18 = vpop.permute.xlu0 %127  ;;  %528 = vmatpush1.msra.mxu1 %v1418_v19 }
  0xa5   :  { %v1247_v17 = vunpack.i.l.bf16 %v1246_v15  ;;  %v131_v20 = vsel %vm129_vm5, %v126_v8, %v128_v18  ;;  %v1248_v39 = vunpack.i.h.bf16 %v1246_v15 }
  0xa6   :  { %460 = vmatprep.subr.mxu0 %v131_v20 }
  0xa7   :  { %v130_v21 = vsel %vm129_vm5, %v1247_v17, %v126_v8 }
  0xa8   :  { %v109_v22 = vpop.permute.xlu1 %108  ;;  %461 = vmatpush1.msra.mxu0 %v130_v21  ;;  %v107_v23 = vpop.permute.xlu0 %106 }
  0xa9   :  { %v112_v24 = vsel %vm110_vm6, %v107_v23, %v109_v22 }
  0xaa   :  { %462 = vmatprep.subr.mxu0 %v112_v24 }
  0xac   :  { %v310_v26 = vpop.permute.xlu1 %309  ;;  %v308_v27 = vpop.permute.xlu0 %307 }
  0xad   :  { %v312_v28 = vsel %vm148_vm4, %v308_v27, %v310_v26  ;;  %v311_v29 = vsel %vm148_vm4, %v1243_v25, %v308_v27  ;;  %v595_v25 = vld [vmem:[%s1710_s3] sm:$0xff] }
  0xae   :  { %529 = vmatprep.subr.mxu1 %v312_v28  ;;  %v606_v28 = vld [vmem:[%s1711_s4] sm:$0xff] }
  0xaf   :  { %530 = vmatpush1.msra.mxu1 %v311_v29 }
  0xb0   :  { %v88_v30 = vpop.permute.xlu1 %87  ;;  %v1251_v31 = vpop.permute.xlu0 %1250 }
  0xb1   :  { %v1252_v32 = vunpack.i.l.bf16 %v1251_v31  ;;  %v1253_v44 = vunpack.i.h.bf16 %v1251_v31 }
  0xb3   :  { %v111_v34 = vsel %vm110_vm6, %v1252_v32, %v107_v23 }
  0xb4   :  { %v290_v33 = vpop.permute.xlu1 %289  ;;  %v90_v35 = vpop.permute.xlu0 %89  ;;  %463 = vmatpush1.msra.mxu0 %v111_v34 }
  0xb5   :  { %v93_v36 = vsel %vm91_vm7, %v88_v30, %v90_v35  ;;  %v293_v43 = vsel %vm129_vm5, %v1248_v39, %v290_v33 }
  0xb6   :  { %464 = vmatprep.subr.mxu0 %v93_v36 }
  0xb8   :  { %v86_v37 = vpop.permute.xlu1 %85  ;;  %v292_v40 = vpop.permute.xlu0 %291 }
  0xb9   :  { %v92_v41 = vsel %vm91_vm7, %v86_v37, %v88_v30  ;;  %v294_v42 = vsel %vm129_vm5, %v290_v33, %v292_v40 }
  0xba   :  { %465 = vmatpush1.msra.mxu0 %v92_v41  ;;  %531 = vmatprep.subr.mxu1 %v294_v42 }
  0xbb   :  { %1203 = vmatmul.mubr.msk.f32.vlgmr.msra.gmra.mxu0 %vm430_vm8, %v393_v38  ;;  %532 = vmatpush1.msra.mxu1 %v293_v43 }
  0xbc   :  { %v274_v45 = vpop.permute.xlu1 %273  ;;  %1059 = vmatprep.mubr.f32.mxu0 %v1301_v2  ;;  %v272_v46 = vpop.permute.xlu0 %271 }
  0xbd   :  { %v276_v47 = vsel %vm110_vm6, %v272_v46, %v274_v45  ;;  %v275_v48 = vsel %vm110_vm6, %v1253_v44, %v272_v46 }
  0xbe   :  { %533 = vmatprep.subr.mxu1 %v276_v47 }
  0xbf   :  { %534 = vmatpush1.msra.mxu1 %v275_v48 }
  0xc0   :  { %v256_v49 = vpop.permute.xlu1 %255  ;;  %v254_v50 = vpop.permute.xlu0 %253 }
  0xc1   :  { %v258_v51 = vsel %vm91_vm7, %v254_v50, %v256_v49 }
  0xc2   :  { %535 = vmatprep.subr.mxu1 %v258_v51 }
  0xc4   :  { %v252_v52 = vpop.permute.xlu0 %251 }
  0xc5   :  { %v257_v53 = vsel %vm91_vm7, %v252_v52, %v254_v50 }
  0xc6   :  { %536 = vmatpush1.msra.mxu1 %v257_v53 }
  0xc7   :  { %1204 = vmatmul.mubr.msk.f32.vlgmr.msra.gmra.mxu1 %vm430_vm8, %v393_v38 }
  0xc8   :  { %1130 = vmatprep.mubr.f32.mxu1 %v1301_v2 }
 0x17b   :  { %v500_v54 = vpop.f32.mrf.mxu0 }
 0x17c   :  { %v581_v56 = vmul.f32 %v500_v54, %v500_v54 }
 0x17d   :  { %v502_v55 = vpop.f32.mrf.mxu0 }
 0x17e   :  { %v582_v57 = vmul.f32 %v502_v55, %v502_v55  ;;  %v576_v58 = vadd.f32 %v502_v55, %v500_v54 }
 0x180   :  { %v585_v62 = vadd.f32 %v582_v57, %v581_v56 }
 0x187   :  { %v571_v59 = vpop.f32.mrf.mxu1 }
 0x188   :  { %v583_v60 = vmul.f32 %v571_v59, %v571_v59  ;;  %v577_v61 = vadd.f32 %v576_v58, %v571_v59 }
 0x189   :  { %v573_v63 = vpop.f32.mrf.mxu1 }
 0x18a   :  { %v578_v0 = vadd.f32 %v577_v61, %v573_v63  ;;  %v584_v3 = vmul.f32 %v573_v63, %v573_v63  ;;  %v586_v5 = vadd.f32 %v585_v62, %v583_v60 }
 0x18c   :  { %579 = vadd.xlane.f32.xlu1 %v578_v0  ;;  %v587_v6 = vadd.f32 %v586_v5, %v584_v3 }
 0x18e   :  { %588 = vadd.xlane.f32.xlu0 %v587_v6 }
 0x19d   :  { %1256 = vrot.lane.b32.xlu1 %v1301_v2, %s1303_s12 }
 0x215   :  { %v580_v1 = vpop.xlane.xlu1 %579 }
 0x216   :  { %v590_v4 = vmul.f32 0.001953125, %v580_v1 }
 0x217   :  { %v589_v8 = vpop.xlane.xlu0 %588 }
 0x218   :  { %v592_v12 = vmul.f32 %v590_v4, %v590_v4  ;;  %v591_v13 = vmul.f32 0.001953125, %v589_v8 }
 0x219   :  { %v1536_v31 = vpop.permute.xlu1 %1256 }
 0x21a   :  { %v593_v15 = vsub.f32 %v591_v13, %v592_v12  ;;  %v1258_v7 = vunpack.i.l.bf16 %v1536_v31 }
 0x21c   :  { %v594_v17 = vmax.f32 %v593_v15, 0.0 }
 0x21e   :  { %v596_v18 = vadd.f32 1e-05, %v594_v17 }
 0x220   :  { %1291 = vrsqrt.f32 %v596_v18  ;;  %vm599_vm9 = vcmp.eq.f32.partialorder %v596_v18, inf  ;;  %v602_v22 = vand.u32 2147483648, %v596_v18  ;;  %vm601_vm10 = vcmp.eq.f32.partialorder %v596_v18, 0.0 }
 0x22d   :  { %v1292_v20 = vpop.eup %1291 }
 0x22e   :  { %v598_v21 = vmul.f32 %v1292_v20, %v596_v18 }
 0x230   :  { %v600_v23 = vsel %vm599_vm9, %v596_v18, %v598_v21 }
 0x231   :  { %v603_v24 = vsel %vm601_vm10, %v602_v22, %v600_v23 }
 0x232   :  { %1293 = vrcp.f32 %v603_v24 }
 0x23f   :  { %v1294_v26 = vpop.eup %1293 }
 0x240   :  { %v605_v27 = vmul.f32 %v1294_v26, %v595_v25  ;;  %v1259_v26 = vunpack.i.h.bf16 %v1536_v31 }
 0x242   :  { %611 = vperm.xlu0 %1254, %v605_v27   ;;  %v607_v29 = vmul.f32 %v605_v27, %v590_v4 }
 0x244   :  { %v608_v30 = vsub.f32 %v606_v28, %v607_v29 }
 0x246   :  { %620 = vperm.xlu1 %1260, %v608_v30   ;;  %1267 = vrot.lane.b32.xlu0 %v1301_v2, %s1304_s19 }
 0x24a   :  { %1277 = vrot.lane.b32.xlu0 %v1301_v2, %s1306_s23  ;;  %1262 = vrot.lane.b32.xlu1 %v1301_v2, %s1302_s11 }
 0x24e   :  { %1282 = vrot.lane.b32.xlu0 %v1301_v2, %s1307_s24  ;;  %1272 = vrot.lane.b32.xlu1 %v1301_v2, %s1305_s22 }
 0x252   :  { %655 = vrot.lane.b32.xlu0 %v1301_v2, %s1309_s26  ;;  %1287 = vrot.lane.b32.xlu1 %v1301_v2, %s1308_s25 }
 0x2bd   :  { %v612_v32 = vpop.permute.xlu0 %611 }
 0x2be   :  { %v614_v33 = vmul.f32 %v612_v32, %v500_v54  ;;  %v615_v34 = vmul.f32 %v612_v32, %v502_v55  ;;  %v616_v35 = vmul.f32 %v612_v32, %v571_v59  ;;  %v617_v36 = vmul.f32 %v612_v32, %v573_v63 }
 0x2c1   :  { %v621_v37 = vpop.permute.xlu1 %620 }
 0x2c2   :  { %v623_v38 = vadd.f32 %v621_v37, %v614_v33  ;;  %v624_v39 = vadd.f32 %v621_v37, %v615_v34  ;;  %v625_v40 = vadd.f32 %v621_v37, %v616_v35  ;;  %v626_v41 = vadd.f32 %v621_v37, %v617_v36 }
 0x2c4   :  { %vm630_vm11 = vcmp.ge.f32.partialorder %v626_v41, 0.0  ;;  %v634_v42 = vmul.f32 0.2, %v626_v41  ;;  %vm628_vm12 = vcmp.ge.f32.partialorder %v624_v39, 0.0  ;;  %v632_v43 = vmul.f32 0.2, %v624_v39 }
 0x2c5   :  { %v633_v46 = vmul.f32 0.2, %v625_v40  ;;  %v631_v47 = vmul.f32 0.2, %v623_v38  ;;  %vm629_vm13 = vcmp.ge.f32.partialorder %v625_v40, 0.0  ;;  %vm627_vm14 = vcmp.ge.f32.partialorder %v623_v38, 0.0 }
 0x2c6   :  { %v1538_v44 = vsel %vm630_vm11, %v626_v41, %v634_v42  ;;  %v1540_v45 = vsel %vm628_vm12, %v624_v39, %v632_v43 }
 0x2c7   :  { %927 = vrot.lane.b32.xlu0 %v1538_v44, %s1302_s11  ;;  %769 = vrot.lane.b32.xlu1 %v1540_v45, %s1302_s11  ;;  %v1546_v48 = vsel %vm629_vm13, %v625_v40, %v633_v46  ;;  %v1548_v49 = vsel %vm627_vm14, %v623_v38, %v631_v47  ;;  %v646_v50 = vmul.f32 %v1540_v45, %v1387_v10 }
 0x2c8   :  { %v639_v51 = vmul.f32 %v1548_v49, %v1398_v14  ;;  %v645_v52 = vmul.f32 %v1548_v49, %v1385_v9  ;;  %v640_v53 = vmul.f32 %v1540_v45, %v1391_v11  ;;  %v797_v54 = vmul.f32 %v1546_v48, %v1398_v14 }
 0x2c9   :  { %v804_v55 = vmul.f32 %v1538_v44, %v1387_v10  ;;  %v803_v56 = vmul.f32 %v1546_v48, %v1385_v9  ;;  %v798_v14 = vmul.f32 %v1538_v44, %v1391_v11  ;;  %v1268_v9 = vpop.permute.xlu0 %1267  ;;  %v1263_v11 = vpop.permute.xlu1 %1262 }
 0x2ca   :  { %v1264_v12 = vunpack.i.l.bf16 %v1263_v11  ;;  %v1269_v18 = vunpack.i.l.bf16 %v1268_v9  ;;  %v1265_v30 = vunpack.i.h.bf16 %v1263_v11  ;;  %v1270_v38 = vunpack.i.h.bf16 %v1268_v9 }
 0x2cb   :  { %925 = vrot.lane.b32.xlu0 %v1546_v48, %s1302_s11  ;;  %767 = vrot.lane.b32.xlu1 %v1548_v49, %s1302_s11 }
 0x2cd   :  { %v1604_v10 = vpop.permute.xlu0 %1277  ;;  %v1608_v58 = vpop.permute.xlu1 %1272 }
 0x2ce   :  { %v1274_v23 = vunpack.i.l.bf16 %v1608_v58  ;;  %v1279_v43 = vunpack.i.l.bf16 %v1604_v10 }
 0x2cf   :  { %677 = vrot.lane.b32.xlu0 %v1540_v45, %s1308_s25  ;;  %675 = vrot.lane.b32.xlu1 %v1548_v49, %s1308_s25 }
 0x2d1   :  { %v1606_v57 = vpop.permute.xlu0 %1282  ;;  %v1612_v60 = vpop.permute.xlu1 %1287 }
 0x2d2   :  { %v1289_v11 = vunpack.i.l.bf16 %v1612_v60 }
 0x2d3   :  { %835 = vrot.lane.b32.xlu0 %v1538_v44, %s1308_s25  ;;  %833 = vrot.lane.b32.xlu1 %v1546_v48, %s1308_s25 }
 0x2d5   :  { %v1610_v59 = vpop.permute.xlu0 %655 }
 0x2d7   :  { %787 = vrot.lane.b32.xlu1 %v646_v50, %s1303_s12  ;;  %749 = vrot.lane.b32.xlu0 %v639_v51, %s1304_s19 }
 0x2db   :  { %785 = vrot.lane.b32.xlu1 %v645_v52, %s1303_s12  ;;  %733 = vrot.lane.b32.xlu0 %v646_v50, %s1305_s22 }
 0x2df   :  { %751 = vrot.lane.b32.xlu1 %v640_v53, %s1304_s19  ;;  %907 = vrot.lane.b32.xlu0 %v797_v54, %s1304_s19 }
 0x2e3   :  { %945 = vrot.lane.b32.xlu1 %v804_v55, %s1303_s12  ;;  %713 = vrot.lane.b32.xlu0 %v640_v53, %s1306_s23 }
 0x2e7   :  { %943 = vrot.lane.b32.xlu1 %v803_v56, %s1303_s12  ;;  %693 = vrot.lane.b32.xlu0 %v645_v52, %s1307_s24 }
 0x2eb   :  { %731 = vrot.lane.b32.xlu1 %v645_v52, %s1305_s22  ;;  %871 = vrot.lane.b32.xlu0 %v798_v14, %s1306_s23 }
 0x2ef   :  { %909 = vrot.lane.b32.xlu1 %v798_v14, %s1304_s19  ;;  %657 = vrot.lane.b32.xlu0 %v639_v51, %s1309_s26 }
 0x2f3   :  { %711 = vrot.lane.b32.xlu1 %v639_v51, %s1306_s23  ;;  %851 = vrot.lane.b32.xlu0 %v803_v56, %s1307_s24 }
 0x2f7   :  { %891 = vrot.lane.b32.xlu1 %v804_v55, %s1305_s22  ;;  %817 = vrot.lane.b32.xlu0 %v798_v14, %s1309_s26 }
 0x2fb   :  { %889 = vrot.lane.b32.xlu1 %v803_v56, %s1305_s22  ;;  %v1284_v56 = vunpack.i.l.bf16 %v1606_v57 }
 0x2ff   :  { %695 = vrot.lane.b32.xlu1 %v646_v50, %s1307_s24 }
 0x303   :  { %869 = vrot.lane.b32.xlu1 %v797_v54, %s1306_s23 }
 0x307   :  { %659 = vrot.lane.b32.xlu1 %v640_v53, %s1309_s26 }
 0x30b   :  { %853 = vrot.lane.b32.xlu1 %v804_v55, %s1307_s24 }
 0x30f   :  { %815 = vrot.lane.b32.xlu1 %v797_v54, %s1309_s26 }
 0x313   :  { %813 = vrot.lane.b32.xlu1 %v1301_v2, %s1309_s26 }
 0x339   :  { %v928_v61 = vpop.permute.xlu0 %927  ;;  %v770_v62 = vpop.permute.xlu1 %769 }
 0x33a   :  { %v774_v17 = vsel %vm209_vm1, %v770_v62, %v1264_v12  ;;  %v932_v34 = vsel %vm209_vm1, %v928_v61, %v1265_v30 }
 0x33d   :  { %v926_v63 = vpop.permute.xlu0 %925  ;;  %v768_v0 = vpop.permute.xlu1 %767 }
 0x33e   :  { %v773_v20 = vsel %vm209_vm1, %v768_v0, %v770_v62  ;;  %v931_v35 = vsel %vm209_vm1, %v926_v63, %v928_v61  ;;  %v1280_v61 = vunpack.i.h.bf16 %v1604_v10 }
 0x341   :  { %v1614_v3 = vpop.permute.xlu0 %677  ;;  %v1616_v5 = vpop.permute.xlu1 %675 }
 0x342   :  { %v680_v62 = vsel %vm110_vm6, %v1616_v5, %v1614_v3  ;;  %v955_v3 = vld [vmem:[%s1712_s2] sm:$0xff] }
 0x345   :  { %v1618_v2 = vpop.permute.xlu0 %835  ;;  %v1620_v6 = vpop.permute.xlu1 %833 }
 0x349   :  { %v788_v1 = vpop.permute.xlu1 %787  ;;  %v750_v8 = vpop.permute.xlu0 %749 }
 0x34a   :  { %v792_v4 = vsel %vm228_vm0, %v788_v1, %v1258_v7 }
 0x34b   :  { %1009 = vmatprep.subr.mxu0 %v792_v4 }
 0x34d   :  { %v786_v13 = vpop.permute.xlu1 %785  ;;  %v734_v21 = vpop.permute.xlu0 %733 }
 0x34e   :  { %v791_v15 = vsel %vm228_vm0, %v786_v13, %v788_v1  ;;  %v738_v27 = vsel %vm171_vm3, %v734_v21, %v1274_v23 }
 0x34f   :  { %1010 = vmatpush1.msra.mxu0 %v791_v15  ;;  %v1290_v15 = vunpack.i.h.bf16 %v1612_v60 }
 0x350   :  { %1011 = vmatprep.subr.mxu0 %v774_v17 }
 0x351   :  { %v752_v22 = vpop.permute.xlu1 %751  ;;  %1012 = vmatpush1.msra.mxu0 %v773_v20  ;;  %v908_v36 = vpop.permute.xlu0 %907 }
 0x352   :  { %v755_v24 = vsel %vm190_vm2, %v750_v8, %v752_v22  ;;  %v756_v25 = vsel %vm190_vm2, %v752_v22, %v1269_v18  ;;  %v1285_v8 = vunpack.i.h.bf16 %v1606_v57  ;;  %v837_v18 = vsel %vm110_vm6, %v1290_v15, %v1620_v6 }
 0x353   :  { %1013 = vmatprep.subr.mxu0 %v756_v25 }
 0x354   :  { %1014 = vmatpush1.msra.mxu0 %v755_v24 }
 0x355   :  { %v946_v28 = vpop.permute.xlu1 %945  ;;  %1015 = vmatprep.subr.mxu0 %v738_v27  ;;  %v714_v42 = vpop.permute.xlu0 %713 }
 0x356   :  { %v950_v29 = vsel %vm228_vm0, %v946_v28, %v1259_v26 }
 0x357   :  { %1080 = vmatprep.subr.mxu1 %v950_v29 }
 0x359   :  { %v944_v32 = vpop.permute.xlu1 %943  ;;  %v694_v51 = vpop.permute.xlu0 %693 }
 0x35a   :  { %v949_v33 = vsel %vm228_vm0, %v944_v32, %v946_v28 }
 0x35b   :  { %1081 = vmatpush1.msra.mxu1 %v949_v33 }
 0x35c   :  { %1082 = vmatprep.subr.mxu1 %v932_v34 }
 0x35d   :  { %v732_v31 = vpop.permute.xlu1 %731  ;;  %1083 = vmatpush1.msra.mxu1 %v931_v35  ;;  %v872_v55 = vpop.permute.xlu0 %871 }
 0x35e   :  { %v737_v37 = vsel %vm171_vm3, %v732_v31, %v734_v21 }
 0x35f   :  { %1016 = vmatpush1.msra.mxu0 %v737_v37 }
 0x360   :  { %1017 = vmatprep.subr.mxu0 %v1540_v45  ;;  %v1275_v45 = vunpack.i.h.bf16 %v1608_v58  ;;  %v697_v58 = vsel %vm129_vm5, %v1284_v56, %v694_v51 }
 0x361   :  { %v910_v39 = vpop.permute.xlu1 %909  ;;  %1018 = vmatpush1.msra.mxu0 %v1548_v49  ;;  %v658_v63 = vpop.permute.xlu0 %657 }
 0x362   :  { %v913_v40 = vsel %vm190_vm2, %v908_v36, %v910_v39  ;;  %v914_v41 = vsel %vm190_vm2, %v910_v39, %v1270_v38 }
 0x363   :  { %1084 = vmatprep.subr.mxu1 %v914_v41 }
 0x364   :  { %1085 = vmatpush1.msra.mxu1 %v913_v40 }
 0x365   :  { %v712_v46 = vpop.permute.xlu1 %711  ;;  %v852_v4 = vpop.permute.xlu0 %851 }
 0x366   :  { %v715_v47 = vsel %vm148_vm4, %v1279_v43, %v712_v46  ;;  %v716_v50 = vsel %vm148_vm4, %v712_v46, %v714_v42  ;;  %v855_v17 = vsel %vm129_vm5, %v1285_v8, %v852_v4 }
 0x367   :  { %1019 = vmatprep.subr.mxu0 %v716_v50 }
 0x368   :  { %1020 = vmatpush1.msra.mxu0 %v715_v47 }
 0x369   :  { %v892_v49 = vpop.permute.xlu1 %891  ;;  %v818_v20 = vpop.permute.xlu0 %817 }
 0x36a   :  { %v896_v52 = vsel %vm171_vm3, %v892_v49, %v1275_v45 }
 0x36b   :  { %1086 = vmatprep.subr.mxu1 %v896_v52 }
 0x36d   :  { %v890_v53 = vpop.permute.xlu1 %889 }
 0x36e   :  { %v895_v54 = vsel %vm171_vm3, %v890_v53, %v892_v49  ;;  %v1167_v53 = vld [vmem:[%s1714_s6] sm:$0xff] }
 0x36f   :  { %1087 = vmatpush1.msra.mxu1 %v895_v54 }
 0x370   :  { %1088 = vmatprep.subr.mxu1 %v1538_v44  ;;  %v679_v44 = vsel %vm110_vm6, %v1289_v11, %v1616_v5  ;;  %v661_v5 = vsel %vm91_vm7, %v1610_v59, %v658_v63  ;;  %v838_v59 = vsel %vm110_vm6, %v1620_v6, %v1618_v2 }
 0x371   :  { %v696_v14 = vpop.permute.xlu1 %695  ;;  %1089 = vmatpush1.msra.mxu1 %v1546_v48 }
 0x372   :  { %v698_v9 = vsel %vm129_vm5, %v694_v51, %v696_v14  ;;  %v1156_v51 = vld [vmem:[%s1713_s5] sm:$0xff] }
 0x373   :  { %1021 = vmatprep.subr.mxu0 %v698_v9 }
 0x374   :  { %1022 = vmatpush1.msra.mxu0 %v697_v58 }
 0x375   :  { %v870_v0 = vpop.permute.xlu1 %869  ;;  %1023 = vmatprep.subr.mxu0 %v680_v62 }
 0x376   :  { %v873_v48 = vsel %vm148_vm4, %v1280_v61, %v870_v0  ;;  %1024 = vmatpush1.msra.mxu0 %v679_v44  ;;  %v874_v7 = vsel %vm148_vm4, %v870_v0, %v872_v55 }
 0x377   :  { %1090 = vmatprep.subr.mxu1 %v874_v7 }
 0x378   :  { %1091 = vmatpush1.msra.mxu1 %v873_v48  ;;  %v1299_v48 = vld [vmem:[%s1706_s0] sm:$0xff] }
 0x379   :  { %v660_v1 = vpop.permute.xlu1 %659 }
 0x37a   :  { %v662_v10 = vsel %vm91_vm7, %v658_v63, %v660_v1  ;;  %v1300_v1 = vld [vmem:[%s1706_s0 + $0x8] sm:$0xff] }
 0x37b   :  { %1025 = vmatprep.subr.mxu0 %v662_v10 }
 0x37c   :  { %1026 = vmatpush1.msra.mxu0 %v661_v5 }
 0x37d   :  { %v854_v12 = vpop.permute.xlu1 %853  ;;  %1205 = vmatmul.mubr.msk.f32.vlgmr.msra.gmra.mxu0 %vm430_vm8, %v955_v3 }
 0x37e   :  { %v856_v13 = vsel %vm129_vm5, %v852_v4, %v854_v12 }
 0x37f   :  { %1092 = vmatprep.subr.mxu1 %v856_v13 }
 0x380   :  { %1093 = vmatpush1.msra.mxu1 %v855_v17 }
 0x381   :  { %v816_v57 = vpop.permute.xlu1 %815  ;;  %1094 = vmatprep.subr.mxu1 %v838_v59 }
 0x382   :  { %1095 = vmatpush1.msra.mxu1 %v837_v18  ;;  %v820_v21 = vsel %vm91_vm7, %v816_v57, %v818_v20 }
 0x383   :  { %1096 = vmatprep.subr.mxu1 %v820_v21 }
 0x385   :  { %v814_v22 = vpop.permute.xlu1 %813 }
 0x386   :  { %v819_v60 = vsel %vm91_vm7, %v814_v22, %v816_v57 }
 0x387   :  { %1097 = vmatpush1.msra.mxu1 %v819_v60 }
 0x388   :  { %1206 = vmatmul.mubr.msk.f32.vlgmr.msra.gmra.mxu1 %vm430_vm8, %v955_v3 }
 0x43d   :  { %v1061_v23 = vpop.f32.mrf.mxu0 }
 0x43e   :  { %v1142_v25 = vmul.f32 %v1061_v23, %v1061_v23 }
 0x43f   :  { %v1063_v24 = vpop.f32.mrf.mxu0 }
 0x440   :  { %v1143_v2 = vmul.f32 %v1063_v24, %v1063_v24  ;;  %v1137_v26 = vadd.f32 %v1063_v24, %v1061_v23 }
 0x442   :  { %v1146_v6 = vadd.f32 %v1143_v2, %v1142_v25 }
 0x448   :  { %v1132_v27 = vpop.f32.mrf.mxu1 }
 0x449   :  { %v1144_v28 = vmul.f32 %v1132_v27, %v1132_v27  ;;  %v1138_v29 = vadd.f32 %v1137_v26, %v1132_v27 }
 0x44a   :  { %v1134_v30 = vpop.f32.mrf.mxu1 }
 0x44b   :  { %v1145_v32 = vmul.f32 %v1134_v30, %v1134_v30  ;;  %v1139_v33 = vadd.f32 %v1138_v29, %v1134_v30  ;;  %v1147_v34 = vadd.f32 %v1146_v6, %v1144_v28 }
 0x44d   :  { %1140 = vadd.xlane.f32.xlu0 %v1139_v33  ;;  %v1148_v35 = vadd.f32 %v1147_v34, %v1145_v32 }
 0x44f   :  { %1149 = vadd.xlane.f32.xlu1 %v1148_v35 }
 0x4d6   :  { %v1141_v36 = vpop.xlane.xlu0 %1140 }
 0x4d7   :  { %v1151_v31 = vmul.f32 0.001953125, %v1141_v36 }
 0x4d8   :  { %v1150_v37 = vpop.xlane.xlu1 %1149 }
 0x4d9   :  { %v1153_v38 = vmul.f32 %v1151_v31, %v1151_v31  ;;  %v1152_v39 = vmul.f32 0.001953125, %v1150_v37 }
 0x4db   :  { %v1154_v40 = vsub.f32 %v1152_v39, %v1153_v38 }
 0x4dd   :  { %v1155_v41 = vmax.f32 %v1154_v40, 0.0 }
 0x4df   :  { %v1157_v42 = vadd.f32 1e-05, %v1155_v41 }
 0x4e1   :  { %1295 = vrsqrt.f32 %v1157_v42  ;;  %vm1160_vm15 = vcmp.eq.f32.partialorder %v1157_v42, inf  ;;  %v1163_v47 = vand.u32 2147483648, %v1157_v42  ;;  %vm1162_vm0 = vcmp.eq.f32.partialorder %v1157_v42, 0.0 }
 0x4ee   :  { %v1296_v43 = vpop.eup %1295 }
 0x4ef   :  { %v1159_v46 = vmul.f32 %v1296_v43, %v1157_v42 }
 0x4f1   :  { %v1161_v50 = vsel %vm1160_vm15, %v1157_v42, %v1159_v46 }
 0x4f2   :  { %v1164_v45 = vsel %vm1162_vm0, %v1163_v47, %v1161_v50 }
 0x4f3   :  { %1297 = vrcp.f32 %v1164_v45 }
 0x500   :  { %v1298_v49 = vpop.eup %1297 }
 0x501   :  { %v1166_v52 = vmul.f32 %v1298_v49, %v1156_v51 }
 0x503   :  { %1172 = vperm.xlu0 %1254, %v1166_v52   ;;  %v1168_v54 = vmul.f32 %v1166_v52, %v1151_v31 }
 0x505   :  { %v1169_v55 = vsub.f32 %v1167_v53, %v1168_v54 }
 0x507   :  { %1181 = vperm.xlu1 %1260, %v1169_v55  }
 0x57e   :  { %v1173_v56 = vpop.permute.xlu0 %1172 }
 0x57f   :  { %v1175_v14 = vmul.f32 %v1173_v56, %v1061_v23  ;;  %v1176_v9 = vmul.f32 %v1173_v56, %v1063_v24  ;;  %v1177_v11 = vmul.f32 %v1173_v56, %v1132_v27  ;;  %v1178_v58 = vmul.f32 %v1173_v56, %v1134_v30 }
 0x582   :  { %v1182_v61 = vpop.permute.xlu1 %1181 }
 0x583   :  { %v1184_v62 = vadd.f32 %v1182_v61, %v1175_v14  ;;  %v1185_v44 = vadd.f32 %v1182_v61, %v1176_v9  ;;  %v1186_v63 = vadd.f32 %v1182_v61, %v1177_v11  ;;  %v1187_v0 = vadd.f32 %v1182_v61, %v1178_v58 }
 0x585   :  { %v1188_v7 = vadd.f32 %v1299_v48, %v1184_v62  ;;  %v1189_v10 = vadd.f32 %v1300_v1, %v1185_v44  ;;  %v1192_v3 = vadd.f32 %v1418_v19, %v1186_v63  ;;  %v1193_v5 = vadd.f32 %v1406_v16, %v1187_v0 }
 0x587   :  { %1190 = vst [vmem:[%s1715_s9] sm:$0xff] %v1188_v7  ;;  %1191 = vst [vmem:[%s1715_s9 + $0x8] sm:$0xff] %v1189_v10 }
 0x588   :  { %1207 = vst [vmem:[%s1715_s9 + $0x10] sm:$0xff] %v1192_v3  ;;  %1208 = vst [vmem:[%s1715_s9 + $0x18] sm:$0xff] %v1193_v5 }

</bundles_post_ra>
